<compile_context>
chip_gen: v7x
topology: tpu7x:2x2x1
jax: 0.10.0
libtpu: 0.0.40
codegen_flags: <defaults>
</compile_context>

<pallas_src>
import functools

import jax
import jax.numpy as jnp
from jax import lax
from jax.experimental import pallas as pl
from jax.experimental.pallas import tpu as pltpu


def _round_up(x, m):
    return (x + m - 1) // m * m


def _vmem_capacity_bytes():
    try:
        return int(pltpu.get_tpu_info().vmem_capacity_bytes)
    except Exception:
        return 128 << 20


def _downsampler_kernel(bxk_ref, byk_ref, img_ref, ker_ref, offh_ref, offv_ref,
                        bsel_ref, out_ref, *, k_size, hp, wp, c, s_tile):
    k2 = k_size * k_size
    cwp = c * wp
    n = k2 * s_tile

    bxk = bxk_ref[0]          # (1, n)  base x + tap x offset, lane index k*S+s
    byk = byk_ref[0]          # (1, n)
    img = img_ref[0]          # (C*Wp, Hp), img[c*Wp + x, y]
    ker = ker_ref[0, 0]       # (1, n)  predicted kernel weight
    offh = offh_ref[0, 0]     # (1, n)  already scaled by offset_unit
    offv = offv_ref[0, 0]     # (1, n)
    bsel = bsel_ref[...]      # (C, C*Wp) channel-block indicator, f32

    # Sampling positions in padded-image coordinates (all (1, n), lane-dense).
    p_x = bxk + offh
    p_y = byk + offv
    fx = jnp.floor(p_x)
    fy = jnp.floor(p_y)
    alpha = p_x - fx
    beta = p_y - fy
    xL = jnp.clip(fx.astype(jnp.int32), 0, wp - 1)
    xR = jnp.clip(xL + 1, 0, wp - 1)
    yT = jnp.clip(fy.astype(jnp.int32), 0, hp - 1)
    yB = jnp.clip(yT + 1, 0, hp - 1)

    # Row factor RyT (Hp, k2*S): bilinear-y one-hot with the predicted kernel
    # weight folded into this (Hp-sized) factor rather than the C*Wp-sized one.
    wT = (1.0 - beta) * ker
    wB = beta * ker
    y_iota = lax.broadcasted_iota(jnp.int32, (hp, n), 0)
    ryt = (jnp.where(y_iota == yT, wT, 0.0)
           + jnp.where(y_iota == yB, wB, 0.0))

    # Step 1 (MXU): V[c*Wp+x, k*S+s] = sum_y img[c*Wp+x, y] * RyT[y, k*S+s].
    # Long k2*S axis is N (lanes); f32 accumulation regardless of operand dtype.
    v = jnp.dot(img, ryt.astype(img.dtype), preferred_element_type=jnp.float32)

    # Column bilinear-x one-hot (C*Wp, k2*S), lane-dense (VPU).
    xsel = lax.broadcasted_iota(jnp.int32, (cwp, 1), 0) % wp
    cx = (jnp.where(xsel == xL, 1.0 - alpha, 0.0)
          + jnp.where(xsel == xR, alpha, 0.0))
    p = v * cx                                            # (C*Wp, k2*S) f32

    # Pre-reduce over the k^2 taps (linear): aligned 128-multiple lane slices.
    psum = p[:, 0:s_tile]
    for k in range(1, k2):
        psum = psum + p[:, k * s_tile:(k + 1) * s_tile]   # (C*Wp, S)

    # Step 2 (small MXU): per-channel reduction over x, emitting (C, S) in the
    # output layout directly (no transpose on the store path).
    out_ref[0] = jnp.dot(bsel, psum,
                         preferred_element_type=jnp.float32).astype(out_ref.dtype)


def downsampler(img, kernels, offsets_h, offsets_v, offset_unit, *, ds, k_size,
                tile_s=None, compute_dtype=jnp.bfloat16):
    """JAX/Pallas equivalent of Downsampler(ds, k_size).forward(...).

    compute_dtype controls the operands of the big gather matmul (accumulation
    is always f32).  Default bfloat16 is the fast MXU path on v5e/v6e/v7x; pass
    jnp.float32 when <=1e-4 agreement with the CUDA reference is required.
    """
    b, c, h, w = img.shape
    k2 = k_size * k_size
    assert kernels.shape[1] == k2
    pad = k_size // 2
    oh, ow = h // ds, w // ds
    assert kernels.shape[2] == oh and kernels.shape[3] == ow
    hp, wp = h + 2 * pad, w + 2 * pad
    ohw = oh * ow
    cwp = c * wp
    item_bytes = jnp.dtype(compute_dtype).itemsize

    # ---- per-generation VMEM budget -------------------------------------
    vmem_cap = _vmem_capacity_bytes()
    ceiling = (40 << 20) if vmem_cap <= (64 << 20) else (96 << 20)

    def _vmem_estimate(ts):
        n_ = k2 * ts
        lane = lambda v: _round_up(v, 128)
        sub = lambda v: _round_up(v, 8)
        est_ = 0
        est_ += 2 * item_bytes * sub(cwp) * lane(hp)   # image block (dbl-buffered)
        est_ += 2 * 4 * 3 * 8 * lane(n_)               # kernels / offsets blocks
        est_ += 2 * 4 * 2 * 8 * lane(n_)               # base-coordinate blocks
        est_ += 2 * 4 * sub(c) * lane(cwp)             # bsel indicator
        est_ += 2 * 4 * sub(c) * lane(ts)              # output tile
        est_ += item_bytes * sub(hp) * lane(n_)        # ryt
        est_ += 4 * 3 * sub(cwp) * lane(n_)            # v, cx, p intermediates
        est_ += 4 * sub(cwp) * lane(ts)                # psum
        return est_

    # ---- spatial tile selection: minimize padded work, amortize step cost --
    if tile_s is None:
        candidates = [512, 384, 256, 128]
        feasible = [t for t in candidates if _vmem_estimate(t) <= ceiling // 2]
        if not feasible:
            feasible = [128]
        tile_s = min(feasible, key=lambda t: (_round_up(ohw, t), -t))
    tile_s = max(128, (tile_s // 128) * 128)
    ohw_pad = _round_up(ohw, tile_s)
    num_tiles = ohw_pad // tile_s
    n = k2 * tile_s

    est = _vmem_estimate(tile_s)
    vmem_limit = min(max(2 * est, 32 << 20), ceiling)
    vmem_limit = max(vmem_limit, est + (4 << 20))           # never below estimate
    vmem_limit = int(min(vmem_limit, vmem_cap - (8 << 20)))  # leave Mosaic headroom

    # ---- host-side layout glue -------------------------------------------
    img_p = jnp.pad(img, ((0, 0), (0, 0), (pad, pad), (pad, pad)), mode="reflect")
    # (B, C*Wp, Hp): img_r[b, c*Wp + x, y] = img_p[b, c, y, x]
    img_r = jnp.transpose(img_p, (0, 1, 3, 2)).reshape(b, cwp, hp).astype(compute_dtype)

    def _tileize(x):  # (B, k2, OH, OW) -> (B, num_tiles, 1, k2*tile_s) lane-major
        xf = x.reshape(b, k2, ohw).astype(jnp.float32)
        xf = jnp.pad(xf, ((0, 0), (0, 0), (0, ohw_pad - ohw)))
        xf = xf.reshape(b, k2, num_tiles, tile_s).transpose(0, 2, 1, 3)
        return xf.reshape(b, num_tiles, 1, n)

    unit = jnp.float32(offset_unit)
    ker_t = _tileize(kernels)
    offh_t = _tileize(offsets_h.astype(jnp.float32) * unit)   # offset_unit folded on host
    offv_t = _tileize(offsets_v.astype(jnp.float32) * unit)

    # Base sampling coordinates with the per-tap (k_x, k_y) offsets folded in,
    # pre-tiled to the same lane-major (k*S + s) order.  Padded-tail pixels use
    # a harmless in-range base; their kernel weights are zero so they emit 0.
    s_idx = jnp.arange(ohw_pad, dtype=jnp.int32)
    valid = s_idx < ohw
    s_cl = jnp.minimum(s_idx, ohw - 1)
    ox = (s_cl % ow).astype(jnp.float32)
    oy = (s_cl // ow).astype(jnp.float32)
    base_x = jnp.where(valid, (ox + 0.5) / float(ow) * float(w) - 0.5, 0.0)
    base_y = jnp.where(valid, (oy + 0.5) / float(oh) * float(h) - 0.5, 0.0)
    kx = (jnp.arange(k2, dtype=jnp.int32) % k_size).astype(jnp.float32)
    ky = (jnp.arange(k2, dtype=jnp.int32) // k_size).astype(jnp.float32)

    def _tap_tile(v):  # (k2, ohw_pad) -> (num_tiles, 1, k2*tile_s)
        vt = v.reshape(k2, num_tiles, tile_s).transpose(1, 0, 2)
        return vt.reshape(num_tiles, 1, n)

    bxk_t = _tap_tile(base_x[None, :] + kx[:, None])
    byk_t = _tap_tile(base_y[None, :] + ky[:, None])

    # Channel-block indicator (kept f32: exact per-channel sums).
    bsel = jnp.repeat(jnp.eye(c, dtype=jnp.float32), wp, axis=1)   # (C, C*Wp)

    kernel = functools.partial(_downsampler_kernel, k_size=k_size, hp=hp, wp=wp,
                               c=c, s_tile=tile_s)

    flops = 2 * b * num_tiles * (cwp * hp * n + c * cwp * tile_s)
    bytes_accessed = (b * item_bytes * cwp * hp
                      + b * num_tiles * 4 * (5 * n + c * tile_s)
                      + 4 * c * cwp)

    out_flat = pl.pallas_call(
        kernel,
        out_shape=jax.ShapeDtypeStruct((b, c, ohw_pad), jnp.float32),
        grid=(b, num_tiles),
        in_specs=[
            pl.BlockSpec((1, 1, n), lambda bi, ti: (ti, 0, 0)),            # base x + tap
            pl.BlockSpec((1, 1, n), lambda bi, ti: (ti, 0, 0)),            # base y + tap
            pl.BlockSpec((1, cwp, hp), lambda bi, ti: (bi, 0, 0)),         # image (C*Wp, Hp)
            pl.BlockSpec((1, 1, 1, n), lambda bi, ti: (bi, ti, 0, 0)),     # kernels
            pl.BlockSpec((1, 1, 1, n), lambda bi, ti: (bi, ti, 0, 0)),     # offsets_h * unit
            pl.BlockSpec((1, 1, 1, n), lambda bi, ti: (bi, ti, 0, 0)),     # offsets_v * unit
            pl.BlockSpec((c, cwp), lambda bi, ti: (0, 0)),                 # bsel
        ],
        out_specs=pl.BlockSpec((1, c, tile_s), lambda bi, ti: (bi, 0, ti)),
        compiler_params=pltpu.CompilerParams(
            dimension_semantics=("parallel", "parallel"),
            vmem_limit_bytes=vmem_limit),
        cost_estimate=pl.CostEstimate(flops=int(flops), transcendentals=0,
                                      bytes_accessed=int(bytes_accessed)),
    )(bxk_t, byk_t, img_r, ker_t, offh_t, offv_t, bsel)

    return out_flat[:, :, :ohw].reshape(b, c, oh, ow)


def downsampler_reference(img, kernels, offsets_h, offsets_v, offset_unit, *, ds, k_size):
    """Pure-JAX reference of the same semantics, for correctness checking."""
    b, c, h, w = img.shape
    pad = k_size // 2
    oh, ow = h // ds, w // ds
    hp, wp = h + 2 * pad, w + 2 * pad
    k2 = k_size * k_size

    img_p = jnp.pad(img, ((0, 0), (0, 0), (pad, pad), (pad, pad)), mode="reflect")
    flat = img_p.reshape(b, c, hp * wp)

    ky = (jnp.arange(k2) // k_size).astype(jnp.float32)
    kx = (jnp.arange(k2) % k_size).astype(jnp.float32)
    oy = jnp.arange(oh, dtype=jnp.float32)
    ox = jnp.arange(ow, dtype=jnp.float32)

    offh = offsets_h * offset_unit
    offv = offsets_v * offset_unit
    p_x = (ox[None, None, None, :] + 0.5) / ow * w + kx[None, :, None, None] + offh - 0.5
    p_y = (oy[None, None, :, None] + 0.5) / oh * h + ky[None, :, None, None] + offv - 0.5
    alpha = p_x - jnp.floor(p_x)
    beta = p_y - jnp.floor(p_y)
    xL = jnp.clip(jnp.floor(p_x).astype(jnp.int32), 0, wp - 1)
    xR = jnp.clip(xL + 1, 0, wp - 1)
    yT = jnp.clip(jnp.floor(p_y).astype(jnp.int32), 0, hp - 1)
    yB = jnp.clip(yT + 1, 0, hp - 1)

    def gather(yi, xi):
        idx = yi * wp + xi                                     # (b,k2,oh,ow)
        return jax.vmap(lambda f, i: f[:, i])(flat, idx)       # (b,c,k2,oh,ow)

    a = alpha[:, None]
    bt = beta[:, None]
    val = ((1 - a) * (1 - bt) * gather(yT, xL) + a * (1 - bt) * gather(yT, xR)
           + (1 - a) * bt * gather(yB, xL) + a * bt * gather(yB, xR))
    return jnp.sum(val * kernels[:, None], axis=2)


if __name__ == "__main__":
    def run_case(key, b, c, h, w, ds, k_size, compute_dtype, atol, rtol):
        oh, ow = h // ds, w // ds
        k2 = k_size * k_size
        k1, k2k, k3, k4 = jax.random.split(key, 4)
        img = jax.random.normal(k1, (b, c, h, w), dtype=jnp.float32)
        # predicted resampling kernels: softmax over the k^2 taps (like CAR)
        kernels = jax.nn.softmax(
            jax.random.normal(k2k, (b, k2, oh, ow), dtype=jnp.float32), axis=1)
        offsets_h = 0.5 * jax.random.normal(k3, (b, k2, oh, ow), dtype=jnp.float32)
        offsets_v = 0.5 * jax.random.normal(k4, (b, k2, oh, ow), dtype=jnp.float32)
        offset_unit = 1.0

        out = downsampler(img, kernels, offsets_h, offsets_v, offset_unit,
                          ds=ds, k_size=k_size, compute_dtype=compute_dtype)
        out = jax.block_until_ready(out)
        ref = downsampler_reference(img, kernels, offsets_h, offsets_v,
                                    offset_unit, ds=ds, k_size=k_size)
        ref = jax.block_until_ready(ref)

        assert out.shape == (b, c, oh, ow), out.shape
        err = float(jnp.max(jnp.abs(out - ref)))
        assert jnp.allclose(out, ref, atol=atol, rtol=rtol), err

    key = jax.random.PRNGKey(0)
    k_a, k_b, k_c = jax.random.split(key, 3)

    # Small case matching the module spec (f32 compute, tight tolerance).
    run_case(k_a, b=2, c=4, h=16, w=16, ds=2, k_size=3,
             compute_dtype=jnp.float32, atol=1e-4, rtol=1e-4)
    # Multi-tile spatial grid + ragged OHW padding (f32, exercises tile choice).
    run_case(k_b, b=1, c=3, h=48, w=48, ds=2, k_size=3,
             compute_dtype=jnp.float32, atol=1e-4, rtol=1e-4)
    # Default fast path: bf16 MXU operands (f32 accumulation), looser tolerance.
    run_case(k_c, b=2, c=4, h=16, w=16, ds=2, k_size=3,
             compute_dtype=jnp.bfloat16, atol=5e-2, rtol=5e-2)

    print("KERNEL_OK")
</pallas_src>

<mosaic_0001>
module attributes {stable_mosaic.version = 11 : i64} {
  func.func @_downsampler_kernel(%arg0: i32, %arg1: i32, %arg2: memref<1x1x1152xf32, #tpu.memory_space<vmem>>, %arg3: memref<1x1x1152xf32, #tpu.memory_space<vmem>>, %arg4: memref<1x72x18xf32, #tpu.memory_space<vmem>>, %arg5: memref<1x1x1x1152xf32, #tpu.memory_space<vmem>>, %arg6: memref<1x1x1x1152xf32, #tpu.memory_space<vmem>>, %arg7: memref<1x1x1x1152xf32, #tpu.memory_space<vmem>>, %arg8: memref<4x72xf32, #tpu.memory_space<vmem>>, %arg9: memref<1x4x128xf32, #tpu.memory_space<vmem>>) attributes {dimension_semantics = [#tpu.dimension_semantics<parallel>, #tpu.dimension_semantics<parallel>], iteration_bounds = array<i64: 2, 1>, scalar_prefetch = 0 : i64, scratch_operands = 0 : i64, tpu.core_type = #tpu.core_type<tc>, window_params = [{transform_indices = @transform_0, window_bounds = array<i64: 1, 1, 1152>}, {transform_indices = @transform_1, window_bounds = array<i64: 1, 1, 1152>}, {transform_indices = @transform_2, window_bounds = array<i64: 1, 72, 18>}, {transform_indices = @transform_3, window_bounds = array<i64: 1, 1, 1, 1152>}, {transform_indices = @transform_4, window_bounds = array<i64: 1, 1, 1, 1152>}, {transform_indices = @transform_5, window_bounds = array<i64: 1, 1, 1, 1152>}, {pipeline_mode = #tpu.pipeline_mode<synchronous>, transform_indices = @transform_6, window_bounds = array<i64: 4, 72>}, {transform_indices = @transform_7, window_bounds = array<i64: 1, 4, 128>}]} {
    %c0 = arith.constant 0 : index
    %c0_0 = arith.constant 0 : index
    %c0_1 = arith.constant 0 : index
    %0 = vector.load %arg2[%c0, %c0_0, %c0_1] : memref<1x1x1152xf32, #tpu.memory_space<vmem>>, vector<1x1x1152xf32>
    %1 = vector.shape_cast %0 : vector<1x1x1152xf32> to vector<1x1152xf32>
    %c0_2 = arith.constant 0 : index
    %c0_3 = arith.constant 0 : index
    %c0_4 = arith.constant 0 : index
    %2 = vector.load %arg3[%c0_2, %c0_3, %c0_4] : memref<1x1x1152xf32, #tpu.memory_space<vmem>>, vector<1x1x1152xf32>
    %3 = vector.shape_cast %2 : vector<1x1x1152xf32> to vector<1x1152xf32>
    %c0_5 = arith.constant 0 : index
    %c0_6 = arith.constant 0 : index
    %c0_7 = arith.constant 0 : index
    %4 = vector.load %arg4[%c0_5, %c0_6, %c0_7] : memref<1x72x18xf32, #tpu.memory_space<vmem>>, vector<1x72x18xf32>
    %5 = vector.shape_cast %4 : vector<1x72x18xf32> to vector<72x18xf32>
    %c0_8 = arith.constant 0 : index
    %c0_9 = arith.constant 0 : index
    %c0_10 = arith.constant 0 : index
    %c0_11 = arith.constant 0 : index
    %6 = vector.load %arg5[%c0_8, %c0_9, %c0_10, %c0_11] : memref<1x1x1x1152xf32, #tpu.memory_space<vmem>>, vector<1x1x1x1152xf32>
    %7 = vector.shape_cast %6 : vector<1x1x1x1152xf32> to vector<1x1152xf32>
    %c0_12 = arith.constant 0 : index
    %c0_13 = arith.constant 0 : index
    %c0_14 = arith.constant 0 : index
    %c0_15 = arith.constant 0 : index
    %8 = vector.load %arg6[%c0_12, %c0_13, %c0_14, %c0_15] : memref<1x1x1x1152xf32, #tpu.memory_space<vmem>>, vector<1x1x1x1152xf32>
    %9 = vector.shape_cast %8 : vector<1x1x1x1152xf32> to vector<1x1152xf32>
    %c0_16 = arith.constant 0 : index
    %c0_17 = arith.constant 0 : index
    %c0_18 = arith.constant 0 : index
    %c0_19 = arith.constant 0 : index
    %10 = vector.load %arg7[%c0_16, %c0_17, %c0_18, %c0_19] : memref<1x1x1x1152xf32, #tpu.memory_space<vmem>>, vector<1x1x1x1152xf32>
    %11 = vector.shape_cast %10 : vector<1x1x1x1152xf32> to vector<1x1152xf32>
    %c0_20 = arith.constant 0 : index
    %c0_21 = arith.constant 0 : index
    %12 = vector.load %arg8[%c0_20, %c0_21] : memref<4x72xf32, #tpu.memory_space<vmem>>, vector<4x72xf32>
    %13 = arith.addf %1, %9 : vector<1x1152xf32>
    %14 = arith.addf %3, %11 : vector<1x1152xf32>
    %15 = math.floor %13 : vector<1x1152xf32>
    %16 = math.floor %14 : vector<1x1152xf32>
    %17 = arith.subf %13, %15 : vector<1x1152xf32>
    %18 = arith.subf %14, %16 : vector<1x1152xf32>
    %19 = arith.fptosi %15 : vector<1x1152xf32> to vector<1x1152xi32>
    %c0_i32 = arith.constant 0 : i32
    %c17_i32 = arith.constant 17 : i32
    %20 = vector.broadcast %c0_i32 : i32 to vector<1x1152xi32>
    %21 = arith.maxsi %20, %19 : vector<1x1152xi32>
    %22 = vector.broadcast %c17_i32 : i32 to vector<1x1152xi32>
    %23 = arith.minsi %22, %21 : vector<1x1152xi32>
    %c1_i32 = arith.constant 1 : i32
    %24 = vector.broadcast %c1_i32 : i32 to vector<1x1152xi32>
    %25 = arith.addi %23, %24 : vector<1x1152xi32>
    %c0_i32_22 = arith.constant 0 : i32
    %c17_i32_23 = arith.constant 17 : i32
    %26 = vector.broadcast %c0_i32_22 : i32 to vector<1x1152xi32>
    %27 = arith.maxsi %26, %25 : vector<1x1152xi32>
    %28 = vector.broadcast %c17_i32_23 : i32 to vector<1x1152xi32>
    %29 = arith.minsi %28, %27 : vector<1x1152xi32>
    %30 = arith.fptosi %16 : vector<1x1152xf32> to vector<1x1152xi32>
    %c0_i32_24 = arith.constant 0 : i32
    %c17_i32_25 = arith.constant 17 : i32
    %31 = vector.broadcast %c0_i32_24 : i32 to vector<1x1152xi32>
    %32 = arith.maxsi %31, %30 : vector<1x1152xi32>
    %33 = vector.broadcast %c17_i32_25 : i32 to vector<1x1152xi32>
    %34 = arith.minsi %33, %32 : vector<1x1152xi32>
    %c1_i32_26 = arith.constant 1 : i32
    %35 = vector.broadcast %c1_i32_26 : i32 to vector<1x1152xi32>
    %36 = arith.addi %34, %35 : vector<1x1152xi32>
    %c0_i32_27 = arith.constant 0 : i32
    %c17_i32_28 = arith.constant 17 : i32
    %37 = vector.broadcast %c0_i32_27 : i32 to vector<1x1152xi32>
    %38 = arith.maxsi %37, %36 : vector<1x1152xi32>
    %39 = vector.broadcast %c17_i32_28 : i32 to vector<1x1152xi32>
    %40 = arith.minsi %39, %38 : vector<1x1152xi32>
    %cst = arith.constant 1.000000e+00 : f32
    %41 = vector.broadcast %cst : f32 to vector<1x1152xf32>
    %42 = arith.subf %41, %18 : vector<1x1152xf32>
    %43 = arith.mulf %42, %7 : vector<1x1152xf32>
    %44 = arith.mulf %18, %7 : vector<1x1152xf32>
    %45 = tpu.iota {dimensions = array<i32: 0>} : vector<18x1152xi32>
    %46 = vector.broadcast %34 : vector<1x1152xi32> to vector<18x1152xi32>
    %47 = arith.cmpi eq, %45, %46 : vector<18x1152xi32>
    %cst_29 = arith.constant 0.000000e+00 : f32
    %48 = vector.shape_cast %43 : vector<1x1152xf32> to vector<1x1152xf32>
    %49 = vector.broadcast %48 : vector<1x1152xf32> to vector<18x1152xf32>
    %50 = vector.broadcast %cst_29 : f32 to vector<18x1152xf32>
    %51 = arith.select %47, %49, %50 : vector<18x1152xi1>, vector<18x1152xf32>
    %52 = vector.broadcast %40 : vector<1x1152xi32> to vector<18x1152xi32>
    %53 = arith.cmpi eq, %45, %52 : vector<18x1152xi32>
    %cst_30 = arith.constant 0.000000e+00 : f32
    %54 = vector.shape_cast %44 : vector<1x1152xf32> to vector<1x1152xf32>
    %55 = vector.broadcast %54 : vector<1x1152xf32> to vector<18x1152xf32>
    %56 = vector.broadcast %cst_30 : f32 to vector<18x1152xf32>
    %57 = arith.select %53, %55, %56 : vector<18x1152xi1>, vector<18x1152xf32>
    %58 = arith.addf %51, %57 : vector<18x1152xf32>
    %cst_31 = arith.constant dense<0.000000e+00> : vector<72x1152xf32>
    %59 = tpu.matmul %5, %58, %cst_31 {dimension_numbers = #tpu.dot_dimension_numbers<[1], [0], [0], [1], [0, 0, 1, 1], [], []>} : vector<72x18xf32>, vector<18x1152xf32>, vector<72x1152xf32> -> vector<72x1152xf32>
    %60 = tpu.iota {dimensions = array<i32: 0>} : vector<72x1xi32>
    %c18_i32 = arith.constant 18 : i32
    %c0_i32_32 = arith.constant 0 : i32
    %61 = arith.cmpi eq, %c18_i32, %c0_i32_32 : i32
    %c1_i32_33 = arith.constant 1 : i32
    %62 = arith.select %61, %c1_i32_33, %c18_i32 : i32
    %63 = vector.broadcast %62 : i32 to vector<72x1xi32>
    %64 = arith.remsi %60, %63 : vector<72x1xi32>
    %c0_i32_34 = arith.constant 0 : i32
    %65 = vector.broadcast %c0_i32_34 : i32 to vector<72x1xi32>
    %66 = arith.cmpi ne, %64, %65 : vector<72x1xi32>
    %c0_i32_35 = arith.constant 0 : i32
    %67 = vector.broadcast %c0_i32_35 : i32 to vector<72x1xi32>
    %68 = arith.cmpi slt, %64, %67 : vector<72x1xi32>
    %c0_i32_36 = arith.constant 0 : i32
    %69 = arith.cmpi slt, %62, %c0_i32_36 : i32
    %70 = vector.broadcast %69 : i1 to vector<72x1xi1>
    %71 = vector.broadcast %70 : vector<72x1xi1> to vector<72x1xi1>
    %72 = arith.xori %68, %71 : vector<72x1xi1>
    %73 = arith.andi %72, %66 : vector<72x1xi1>
    %74 = vector.broadcast %62 : i32 to vector<72x1xi32>
    %75 = arith.addi %64, %74 : vector<72x1xi32>
    %76 = arith.select %73, %75, %64 : vector<72x1xi1>, vector<72x1xi32>
    %77 = vector.broadcast %76 : vector<72x1xi32> to vector<72x1152xi32>
    %78 = vector.broadcast %23 : vector<1x1152xi32> to vector<72x1152xi32>
    %79 = arith.cmpi eq, %77, %78 : vector<72x1152xi32>
    %cst_37 = arith.constant 1.000000e+00 : f32
    %80 = vector.broadcast %cst_37 : f32 to vector<1x1152xf32>
    %81 = arith.subf %80, %17 : vector<1x1152xf32>
    %cst_38 = arith.constant 0.000000e+00 : f32
    %82 = vector.shape_cast %81 : vector<1x1152xf32> to vector<1x1152xf32>
    %83 = vector.broadcast %82 : vector<1x1152xf32> to vector<72x1152xf32>
    %84 = vector.broadcast %cst_38 : f32 to vector<72x1152xf32>
    %85 = arith.select %79, %83, %84 : vector<72x1152xi1>, vector<72x1152xf32>
    %86 = vector.broadcast %76 : vector<72x1xi32> to vector<72x1152xi32>
    %87 = vector.broadcast %29 : vector<1x1152xi32> to vector<72x1152xi32>
    %88 = arith.cmpi eq, %86, %87 : vector<72x1152xi32>
    %cst_39 = arith.constant 0.000000e+00 : f32
    %89 = vector.shape_cast %17 : vector<1x1152xf32> to vector<1x1152xf32>
    %90 = vector.broadcast %89 : vector<1x1152xf32> to vector<72x1152xf32>
    %91 = vector.broadcast %cst_39 : f32 to vector<72x1152xf32>
    %92 = arith.select %88, %90, %91 : vector<72x1152xi1>, vector<72x1152xf32>
    %93 = arith.addf %85, %92 : vector<72x1152xf32>
    %94 = arith.mulf %59, %93 : vector<72x1152xf32>
    %95 = vector.extract_strided_slice %94 {offsets = [0, 0], sizes = [72, 128], strides = [1, 1]} : vector<72x1152xf32> to vector<72x128xf32>
    %96 = vector.extract_strided_slice %94 {offsets = [0, 128], sizes = [72, 128], strides = [1, 1]} : vector<72x1152xf32> to vector<72x128xf32>
    %97 = arith.addf %95, %96 : vector<72x128xf32>
    %98 = vector.extract_strided_slice %94 {offsets = [0, 256], sizes = [72, 128], strides = [1, 1]} : vector<72x1152xf32> to vector<72x128xf32>
    %99 = arith.addf %97, %98 : vector<72x128xf32>
    %100 = vector.extract_strided_slice %94 {offsets = [0, 384], sizes = [72, 128], strides = [1, 1]} : vector<72x1152xf32> to vector<72x128xf32>
    %101 = arith.addf %99, %100 : vector<72x128xf32>
    %102 = vector.extract_strided_slice %94 {offsets = [0, 512], sizes = [72, 128], strides = [1, 1]} : vector<72x1152xf32> to vector<72x128xf32>
    %103 = arith.addf %101, %102 : vector<72x128xf32>
    %104 = vector.extract_strided_slice %94 {offsets = [0, 640], sizes = [72, 128], strides = [1, 1]} : vector<72x1152xf32> to vector<72x128xf32>
    %105 = arith.addf %103, %104 : vector<72x128xf32>
    %106 = vector.extract_strided_slice %94 {offsets = [0, 768], sizes = [72, 128], strides = [1, 1]} : vector<72x1152xf32> to vector<72x128xf32>
    %107 = arith.addf %105, %106 : vector<72x128xf32>
    %108 = vector.extract_strided_slice %94 {offsets = [0, 896], sizes = [72, 128], strides = [1, 1]} : vector<72x1152xf32> to vector<72x128xf32>
    %109 = arith.addf %107, %108 : vector<72x128xf32>
    %110 = vector.extract_strided_slice %94 {offsets = [0, 1024], sizes = [72, 128], strides = [1, 1]} : vector<72x1152xf32> to vector<72x128xf32>
    %111 = arith.addf %109, %110 : vector<72x128xf32>
    %cst_40 = arith.constant dense<0.000000e+00> : vector<4x128xf32>
    %112 = tpu.matmul %12, %111, %cst_40 {dimension_numbers = #tpu.dot_dimension_numbers<[1], [0], [0], [1], [0, 0, 1, 1], [], []>} : vector<4x72xf32>, vector<72x128xf32>, vector<4x128xf32> -> vector<4x128xf32>
    %c0_41 = arith.constant 0 : index
    %c0_42 = arith.constant 0 : index
    %c0_43 = arith.constant 0 : index
    %113 = vector.load %arg9[%c0_41, %c0_42, %c0_43] : memref<1x4x128xf32, #tpu.memory_space<vmem>>, vector<1x4x128xf32>
    %114 = vector.shape_cast %113 : vector<1x4x128xf32> to vector<4x128xf32>
    %115 = vector.shape_cast %112 : vector<4x128xf32> to vector<1x4x128xf32>
    tpu.vector_store %arg9[%c0_41, %c0_42, %c0_43], %115 {strides = array<i32>} : memref<1x4x128xf32, #tpu.memory_space<vmem>>, vector<1x4x128xf32>,
    return
  }
  func.func @transform_0(%arg0: i32, %arg1: i32) -> (i32, i32, i32) {
    %c0_i32 = arith.constant 0 : i32
    %c0_i32_0 = arith.constant 0 : i32
    %c0_i32_1 = arith.constant 0 : i32
    return %arg1, %c0_i32, %c0_i32_0 : i32, i32, i32
  }
  func.func @transform_1(%arg0: i32, %arg1: i32) -> (i32, i32, i32) {
    %c0_i32 = arith.constant 0 : i32
    %c0_i32_0 = arith.constant 0 : i32
    %c0_i32_1 = arith.constant 0 : i32
    return %arg1, %c0_i32, %c0_i32_0 : i32, i32, i32
  }
  func.func @transform_2(%arg0: i32, %arg1: i32) -> (i32, i32, i32) {
    %c0_i32 = arith.constant 0 : i32
    %c0_i32_0 = arith.constant 0 : i32
    %c0_i32_1 = arith.constant 0 : i32
    return %arg0, %c0_i32, %c0_i32_0 : i32, i32, i32
  }
  func.func @transform_3(%arg0: i32, %arg1: i32) -> (i32, i32, i32, i32) {
    %c0_i32 = arith.constant 0 : i32
    %c0_i32_0 = arith.constant 0 : i32
    %c0_i32_1 = arith.constant 0 : i32
    return %arg0, %arg1, %c0_i32, %c0_i32_0 : i32, i32, i32, i32
  }
  func.func @transform_4(%arg0: i32, %arg1: i32) -> (i32, i32, i32, i32) {
    %c0_i32 = arith.constant 0 : i32
    %c0_i32_0 = arith.constant 0 : i32
    %c0_i32_1 = arith.constant 0 : i32
    return %arg0, %arg1, %c0_i32, %c0_i32_0 : i32, i32, i32, i32
  }
  func.func @transform_5(%arg0: i32, %arg1: i32) -> (i32, i32, i32, i32) {
    %c0_i32 = arith.constant 0 : i32
    %c0_i32_0 = arith.constant 0 : i32
    %c0_i32_1 = arith.constant 0 : i32
    return %arg0, %arg1, %c0_i32, %c0_i32_0 : i32, i32, i32, i32
  }
  func.func @transform_6(%arg0: i32, %arg1: i32) -> (i32, i32) {
    %c0_i32 = arith.constant 0 : i32
    %c0_i32_0 = arith.constant 0 : i32
    %c0_i32_1 = arith.constant 0 : i32
    return %c0_i32, %c0_i32_0 : i32, i32
  }
  func.func @transform_7(%arg0: i32, %arg1: i32) -> (i32, i32, i32) {
    %c0_i32 = arith.constant 0 : i32
    %c0_i32_0 = arith.constant 0 : i32
    return %arg0, %c0_i32, %arg1 : i32, i32, i32
  }
}

</mosaic_0001>

<bundles_post_ra>
// kernel: tpu_custom_call.1
= control target key start
LH: loop header
LB: loop body
LE: loop exit
PB: predicated region body
PF: predicated region fallthrough
CT: control target
= control target key end

     0   :  { %12 = vsyncpa [#allocation3], 0  ;;  %s4708_s0 = inlined_call_operand.vmem [shape: f32[1,1,1152], index: 0, kind: input, shape index: {}]   ;;  %s4709_s1 = inlined_call_operand.vmem [shape: f32[1,1,1152], index: 1, kind: input, shape index: {}]   ;;  %s4710_s2 = inlined_call_operand.vmem [shape: f32[2,72,18], index: 2, kind: input, shape index: {}]   ;;  %s4711_s3 = inlined_call_operand.vmem [shape: f32[2,1,1,1152], index: 3, kind: input, shape index: {}]   ;;  %s4712_s4 = inlined_call_operand.vmem [shape: f32[2,1,1,1152], index: 4, kind: input, shape index: {}]   ;;  %s4713_s5 = inlined_call_operand.vmem [shape: f32[2,1,1,1152], index: 5, kind: input, shape index: {}]   ;;  %s4714_s6 = inlined_call_operand.vmem [shape: f32[4,72], index: 6, kind: input, shape index: {}]   ;;  %s4715_s7 = inlined_call_operand.hbm [shape: f32[2,4,128], index: 7, kind: output, shape index: {}]  }
   0x1   :  { %14 = vsyncpa [#allocation3 + $0x1], 0  ;;  %s2950_s24 = smov 0   ;;  %s2952_s25 = smov 0  }
   0x2   :  { %s2954_s26 = smov 0   ;;  %s2956_s27 = smov 0  }
   0x3   :  { %s2958_s28 = smov 0   ;;  %s2960_s29 = smov 0  }
   0x4 LB: > { %s2561_s30 = sadd.s32 4294967295, %s2904_s29   ;;  %s2562_s8 = sadd.s32 4294967294, %s2904_s29   ;;  %s2904_s29 = sphi %s2960_s29, %s20_s29   ;;  %s2900_s28 = sphi %s2958_s28, %s4825_s28   ;;  %s2896_s27 = sphi %s2956_s27, %s4824_s27   ;;  %s2892_s26 = sphi %s2954_s26, %s4823_s26   ;;  %s2888_s25 = sphi %s2952_s25, %s4822_s25   ;;  %s2884_s24 = sphi %s2950_s24, %s4821_s24  }
   0x5   : > { %s32_s9 = sadd.s32 1, %s2900_s28  ;;  %s224_s10 = sadd.s32 1, %s2892_s26 }
   0x6   : > { %p34_p0 = scmp.ge.s32.totalorder %s32_s9, 2  ;;  %p234_p1 = scmp.ne.s32.totalorder %s2892_s26, %s2888_s25 }
   0x7   : > { %p235_p2 = scmp.eq.s32.totalorder %s2561_s30, 1  ;;  %p240_p3 = scmp.ne.s32.totalorder %s2888_s25, %s2884_s24 }
   0x8   : > { %s4827_s9 = smov (%p34_p0, %s32_s9), 0  ;;  %p241_p5 = scmp.eq.s32.totalorder %s2562_s8, 1 }
   0x9   : > { %p2990_p4 = por %p235_p2, %p234_p1  ;;  %s219_s12 = ssub.s32 %s2900_s28, %s4827_s9 }
   0xa   : > { %p2567_p6 = scmp.ge.s32.totalorder %s2904_s29, 1  ;;  %p222_p7 = scmp.eq.s32.totalorder %s219_s12, 0 }
   0xb   : > { %p2997_p8 = por %p241_p5, %p240_p3  ;;  %p317_p9 = scmp.lt.s32.totalorder %s2904_s29, 3 }
   0xc   : > { %s3003_s14 = scalar_select %p222_p7, %s2892_s26, %s224_s10  }
   0xd   : > { %p318_p10 = pnand %p2567_p6, %p317_p9 }
   0xf   : > { %321 = sbr.rel (%p318_p10) target bundleno = 596 (0x254), region = 48 }
  0x16   : > { %p389_p11 = scmp.lt.s32.totalorder %s2896_s27, 1  ;;  %v4716_v0 = vmov 0.0   ;;  %v420_v1 = vld [vmem:[%s4709_s1] sm:$0xff]  ;;  %v496_v2 = vlaneseq  ;;  %v421_v5 = vld [vmem:[%s4709_s1 + $0x8] sm:$0x1]  ;;  %vm829_vm9 = vcmask 1041408  }
  0x17   : > { %921 = vmatprep.mubr.f32.mxu0 %v4716_v0  ;;  %951 = vmatprep.mubr.f32.mxu1 %v4716_v0  ;;  %s2626_s19 = sshll.u32 %s2896_s27, 6 }
  0x18   : > { %s3009_s15 = scalar_select %p389_p11, %s2896_s27, 1  ;;  %v3030_v6 = vshrl.u32 %v496_v2, 7 }
  0x19   : > { %s4663_s22 = scalar_lea.hbm %s4715_s7, %s2626_s19  ;;  %s2909_s27 = smov [#allocation2]  }
  0x1a   : > { %s3012_s16 = smul.u32 9, %s3009_s15  ;;  %v3034_v13 = vadd.s32 8, %v3030_v6  ;;  %v3037_v14 = vsub.s32 1, %v3030_v6  ;;  %v3040_v15 = vsub.s32 0, %v3030_v6  ;;  %v3043_v16 = vadd.s32 16, %v3030_v6 }
  0x1b   : > { %v3048_v21 = vsub.s32 3, %v3030_v6  ;;  %v3051_v22 = vsub.s32 5, %v3030_v6  ;;  %v3054_v23 = vsub.s32 2, %v3030_v6  ;;  %v3057_v24 = vsub.s32 4, %v3030_v6  ;;  %s2740_s12 = smul.u32 72, %s3009_s15 }
  0x1c   : > { %s417_s21 = scalar_lea.vmem %s4713_s5, %s3012_s16  ;;  %s3025_s30 = scalar_lea.vmem %s4711_s3, %s3012_s16  ;;  %4738 = vst [vmem:[#allocation5_spill] sm:$0xff] %v3040_v15  ;;  %v3060_v25 = vsub.s32 7, %v3030_v6  ;;  %v3065_v27 = vsub.s32 6, %v3030_v6 }
  0x1d   : > { %v435_v3 = vld [vmem:[%s417_s21] sm:$0xff]  ;;  %v436_v8 = vld [vmem:[%s417_s21 + $0x8] sm:$0x1]  ;;  %s3172_s18 = scalar_lea.vmem %s4710_s2, %s2740_s12  ;;  %s3497_s21 = scalar_lea.vmem %s4712_s4, %s3012_s16 }
  0x1e   : > { %v440_v4 = vadd.f32 %v435_v3, %v420_v1  ;;  %v431_v9 = vld [vmem:[%s3025_s30] sm:$0xff]  ;;  %v441_v10 = vadd.f32 %v436_v8, %v421_v5  ;;  %s378_s12 = sand.u32 1, %s2888_s25  }
  0x1f   : > { %s2568_s15 = sshll.u32 %s378_s12, 2  ;;  %s2395_s23 = scalar_lea.sflag [#allocation3], %s378_s12 }
  0x20   : > { %v444_v7 = vfloor.f32 %v440_v4  ;;  %v445_v17 = vfloor.f32 %v441_v10  ;;  %s380_s17 = scalar_lea.vmem [#allocation2], %s2568_s15 }
  0x22   : > { %v448_v11 = vsub.f32 %v440_v4, %v444_v7  ;;  %v2746_v12 = vtrunc.f32 %v444_v7  ;;  %v3067_v28 = vsub.f32 %v441_v10, %v445_v17  ;;  %v3077_v32 = vtrunc.f32 %v445_v17 }
  0x24   : > { %v2747_v18 = vcvt.f32.s32 %v2746_v12  ;;  %v490_v19 = vsub.f32 1.0, %v448_v11  ;;  %v3045_v20 = vmul.f32 %v448_v11, %v431_v9 }
  0x26   : > { %vm472_vm0 = vcmp.gt.s32.totalorder %v2747_v18, 0  ;;  %v3062_v26 = vmul.f32 %v490_v19, %v431_v9  ;;  %v3071_v30 = vrot.slane %v3045_v20, %v3037_v14  ;;  %v3075_v31 = vrot.slane %v3045_v20, %v3040_v15 }
  0x27   : > { %v473_v29 = vsel %vm472_vm0, %v2747_v18, 0  ;;  %v3085_v35 = vrot.slane %v3045_v20, %v3048_v21  ;;  %v3099_v39 = vrot.slane %v3045_v20, %v3051_v22  ;;  %v3124_v47 = vrot.slane %v3045_v20, %v3054_v23 }
  0x28   : > { %vm476_vm1 = vcmp.lt.s32.totalorder %v473_v29, 17  ;;  %v572_v33 = vrot.slane %v3062_v26, %v3037_v14  ;;  %v568_v34 = vrot.slane %v3062_v26, %v3040_v15  ;;  %v3091_v37 = vrot.slane %v3062_v26, %v3048_v21 }
  0x29   : > { %v3087_v36 = vsel %vm476_vm1, %v473_v29, 17  ;;  %v3095_v38 = vrot.slane %v3062_v26, %v3051_v22  ;;  %v3120_v46 = vrot.slane %v3062_v26, %v3054_v23 }
  0x2a   : > { %v480_v40 = vadd.s32 1, %v3087_v36  ;;  %v507_v41 = vrot.slane %v3087_v36, %v3037_v14  ;;  %v503_v42 = vrot.slane %v3087_v36, %v3040_v15  ;;  %v3108_v43 = vrot.slane %v3087_v36, %v3048_v21 }
  0x2b   : > { %v3112_v44 = vrot.slane %v3087_v36, %v3051_v22  ;;  %v3116_v45 = vrot.slane %v3087_v36, %v3054_v23 }
  0x2c   : > { %vm482_vm2 = vcmp.gt.s32.totalorder %v480_v40, 0  ;;  %vm537_vm3 = vcmp.eq.s32.totalorder %v3030_v6, %v507_v41  ;;  %vm546_vm4 = vcmp.eq.s32.totalorder %v3034_v13, %v507_v41  ;;  %vm536_vm5 = vcmp.eq.s32.totalorder %v3030_v6, %v503_v42 }
  0x2d   : > { %v483_v48 = vsel %vm482_vm2, %v480_v40, 0  ;;  %v611_v49 = vsel %vm537_vm3, %v572_v33, 0.0  ;;  %v620_v50 = vsel %vm546_vm4, %v572_v33, 0.0  ;;  %vm545_vm6 = vcmp.eq.s32.totalorder %v3034_v13, %v503_v42 }
  0x2e   : > { %vm486_vm7 = vcmp.lt.s32.totalorder %v483_v48, 17  ;;  %v610_v51 = vsel %vm536_vm5, %v568_v34, 0.0  ;;  %v619_v52 = vsel %vm545_vm6, %v568_v34, 0.0  ;;  %vm555_vm8 = vcmp.eq.s32.totalorder %v3043_v16, %v507_v41 }
  0x2f   : > { %v3131_v53 = vsel %vm486_vm7, %v483_v48, 17  ;;  %v629_v54 = vsel %vm555_vm8, %v572_v33, 0.0  ;;  %vm554_vm10 = vcmp.eq.s32.totalorder %v3043_v16, %v503_v42  ;;  %vm539_vm11 = vcmp.eq.s32.totalorder %v3030_v6, %v3108_v43  ;;  %v3198_v48 = vld [vmem:[%s3172_s18] sm:$0xff] }
  0x30   : > { %v644_v55 = vrot.slane %v3131_v53, %v3037_v14  ;;  %v640_v56 = vrot.slane %v3131_v53, %v3040_v15  ;;  %v628_v57 = vsel %vm554_vm10, %v568_v34, 0.0  ;;  %vm548_vm12 = vcmp.eq.s32.totalorder %v3034_v13, %v3108_v43 }
  0x31   : > { %v613_v58 = vsel %vm539_vm11, %v3091_v37, 0.0  ;;  %v622_v59 = vsel %vm548_vm12, %v3091_v37, 0.0  ;;  %v3146_v60 = vrot.slane %v3131_v53, %v3048_v21  ;;  %vm541_vm13 = vcmp.eq.s32.totalorder %v3030_v6, %v3112_v44 }
  0x32   : > { %vm674_vm14 = vcmp.eq.s32.totalorder %v3030_v6, %v644_v55  ;;  %vm683_vm15 = vcmp.eq.s32.totalorder %v3034_v13, %v644_v55  ;;  %vm673_vm0 = vcmp.eq.s32.totalorder %v3030_v6, %v640_v56  ;;  %vm682_vm1 = vcmp.eq.s32.totalorder %v3034_v13, %v640_v56 }
  0x33   : > { %v748_v61 = vsel %vm674_vm14, %v3071_v30, 0.0  ;;  %v757_v62 = vsel %vm683_vm15, %v3071_v30, 0.0  ;;  %v747_v63 = vsel %vm673_vm0, %v3075_v31, 0.0  ;;  %v756_v1 = vsel %vm682_vm1, %v3075_v31, 0.0 }
  0x34   : > { %vm801_vm2 = vcmask 146432   ;;  %v775_v2 = vadd.f32 %v748_v61, %v611_v49  ;;  %v784_v3 = vadd.f32 %v757_v62, %v620_v50  ;;  %v774_v4 = vadd.f32 %v747_v63, %v610_v51  ;;  %v3201_v49 = vld [vmem:[%s3172_s18 + $0x28] sm:$0xff] }
  0x35   : > { %v783_v5 = vadd.f32 %v756_v1, %v619_v52  ;;  %vm692_vm3 = vcmp.eq.s32.totalorder %v3043_v16, %v644_v55  ;;  %vm691_vm4 = vcmp.eq.s32.totalorder %v3043_v16, %v640_v56  ;;  %vm676_vm5 = vcmp.eq.s32.totalorder %v3030_v6, %v3146_v60  ;;  %v3235_v63 = vld [vmem:[%s3172_s18 + $0x8] sm:$0xff]  ;;  %v3238_v1 = vld [vmem:[%s3172_s18 + $0x30] sm:$0xff] }
  0x36   : > { %vm685_vm6 = vcmp.eq.s32.totalorder %v3034_v13, %v3146_v60  ;;  %v2705_v7 = vpack.c.bf16 %v784_v3, %v775_v2  ;;  %v766_v9 = vsel %vm692_vm3, %v3071_v30, 0.0  ;;  %v765_v10 = vsel %vm691_vm4, %v3075_v31, 0.0 }
  0x37   : > { %v2707_v8 = vpack.c.bf16 %v783_v5, %v774_v4  ;;  %v793_v11 = vadd.f32 %v766_v9, %v629_v54  ;;  %v792_v12 = vadd.f32 %v765_v10, %v628_v57  ;;  %v750_v17 = vsel %vm676_vm5, %v3085_v35, 0.0 }
  0x38   : > { %v759_v18 = vsel %vm685_vm6, %v3085_v35, 0.0  ;;  %2706 = vmatprep.subr.bf16.mxu0 %v2705_v7  ;;  %2736 = vmatprep.subr.bf16.mxu1 %v2705_v7  ;;  %v777_v19 = vadd.f32 %v750_v17, %v613_v58  ;;  %vm550_vm7 = vcmp.eq.s32.totalorder %v3034_v13, %v3112_v44  ;;  %v615_v30 = vsel %vm541_vm13, %v3095_v38, 0.0 }
  0x39   : > { %v786_v29 = vadd.f32 %v759_v18, %v622_v59  ;;  %2708 = vmatpush1.bf16.msra.mxu0 %v2707_v8  ;;  %2738 = vmatpush1.bf16.msra.mxu1 %v2707_v8  ;;  %v624_v31 = vsel %vm550_vm7, %v3095_v38, 0.0  ;;  %v3183_v33 = vrot.slane %v3131_v53, %v3051_v22  ;;  %vm538_vm8 = vcmp.eq.s32.totalorder %v3030_v6, %v3116_v45 }
  0x3a   : > { %vm547_vm10 = vcmp.eq.s32.totalorder %v3034_v13, %v3116_v45  ;;  %2570 = vmatprep.subr.msk.mxu0 %vm829_vm9, %v793_v11  ;;  %2737 = vmatprep.subr.msk.mxu1 %vm829_vm9, %v793_v11  ;;  %v612_v40 = vsel %vm538_vm8, %v3120_v46, 0.0  ;;  %v3195_v42 = vrot.slane %v3131_v53, %v3054_v23  ;;  %v3209_v50 = vrot.slane %v3087_v36, %v3057_v24 }
  0x3b   : > { %v2709_v34 = vpack.c.bf16 %v786_v29, %v777_v19  ;;  %v621_v41 = vsel %vm547_vm10, %v3120_v46, 0.0  ;;  %vm678_vm11 = vcmp.eq.s32.totalorder %v3030_v6, %v3183_v33  ;;  %vm687_vm12 = vcmp.eq.s32.totalorder %v3034_v13, %v3183_v33 }
  0x3c   : > { %v3213_v51 = vrot.slane %v3062_v26, %v3057_v24  ;;  %v752_v52 = vsel %vm678_vm11, %v3099_v39, 0.0  ;;  %v761_v54 = vsel %vm687_vm12, %v3099_v39, 0.0  ;;  %vm675_vm13 = vcmp.eq.s32.totalorder %v3030_v6, %v3195_v42 }
  0x3d   : > { %vm684_vm14 = vcmp.eq.s32.totalorder %v3034_v13, %v3195_v42  ;;  %2571 = vmatpush1.msk.msra.mxu0 %vm829_vm9, %v792_v12  ;;  %2739 = vmatpush1.msk.msra.mxu1 %vm829_vm9, %v792_v12  ;;  %v779_v55 = vadd.f32 %v752_v52, %v615_v30  ;;  %v788_v56 = vadd.f32 %v761_v54, %v624_v31  ;;  %v749_v57 = vsel %vm675_vm13, %v3124_v47, 0.0 }
  0x3e   : > { %v758_v58 = vsel %vm684_vm14, %v3124_v47, 0.0  ;;  %2572 = vmatmul.mubr.msk.f32.vlgmr.msra.gmra.mrb[0].mxu0 %vm801_vm2, %v3198_v48  ;;  %2577 = vmatmul.mubr.msk.f32.vlgmr.msra.gmra.mrb[0].mxu1 %vm801_vm2, %v3201_v49  ;;  %v776_v59 = vadd.f32 %v749_v57, %v612_v40  ;;  %vm540_vm15 = vcmp.eq.s32.totalorder %v3030_v6, %v3209_v50  ;;  %v2749_v62 = vcvt.f32.s32 %v3077_v32  ;;  %v3345_v57 = vld [vmem:[%s3172_s18 + $0x20] sm:$0xff] }
  0x3f   : > { %v785_v61 = vadd.f32 %v758_v58, %v621_v41  ;;  %927 = vmatprep.mubr.f32.mxu0 %v4716_v0  ;;  %957 = vmatprep.mubr.f32.mxu1 %v4716_v0  ;;  %v2713_v2 = vpack.c.bf16 %v788_v56, %v779_v55  ;;  %vm549_vm0 = vcmp.eq.s32.totalorder %v3034_v13, %v3209_v50  ;;  %v614_v3 = vsel %vm540_vm15, %v3213_v51, 0.0  ;;  %v432_v56 = vld [vmem:[%s3025_s30 + $0x8] sm:$0x1]  ;;  %s2830_s30 = sshll.u32 %s2909_s27, 4  ;;  %s2831_s30 = int_to_ptr.vmem [resolvable:$false] %s2830_s30 }
  0x40   : > { %v656_v4 = vrot.slane %v3131_v53, %v3057_v24  ;;  %2710 = vmatprep.subr.bf16.mxu1 %v2709_v34  ;;  %v623_v7 = vsel %vm549_vm0, %v3213_v51, 0.0  ;;  %v721_v8 = vrot.slane %v3045_v20, %v3057_v24  ;;  %vm557_vm1 = vcmp.eq.s32.totalorder %v3043_v16, %v3108_v43  ;;  %s2832_s8 = scalar_lea.vmem %s2831_s30, 128 }
  0x41   : > { %v2711_v5 = vpack.c.bf16 %v785_v61, %v776_v59  ;;  %2714 = vmatprep.subr.bf16.mxu0 %v2713_v2  ;;  %v631_v9 = vsel %vm557_vm1, %v3091_v37, 0.0  ;;  %vm694_vm5 = vcmp.eq.s32.totalorder %v3043_v16, %v3146_v60  ;;  %vm556_vm6 = vcmp.eq.s32.totalorder %v3043_v16, %v3116_v45  ;;  %v3265_v37 = vld [vmem:[%s3172_s18 + $0x10] sm:$0xff]  ;;  %v3268_v60 = vld [vmem:[%s3172_s18 + $0x38] sm:$0xff] }
  0x42   : > { %vm677_vm3 = vcmp.eq.s32.totalorder %v3030_v6, %v656_v4  ;;  %vm686_vm4 = vcmp.eq.s32.totalorder %v3034_v13, %v656_v4  ;;  %2573 = vmatmul.mubr.msk.f32.gmra.mrb[2].mxu0 %vm801_vm2, %v3235_v63  ;;  %2578 = vmatmul.mubr.msk.f32.gmra.mrb[2].mxu1 %vm801_vm2, %v3238_v1  ;;  %v768_v43 = vsel %vm694_vm5, %v3085_v35, 0.0  ;;  %v630_v19 = vsel %vm556_vm6, %v3120_v46, 0.0 }
  0x43   : > { %v751_v10 = vsel %vm677_vm3, %v721_v8, 0.0  ;;  %v760_v11 = vsel %vm686_vm4, %v721_v8, 0.0  ;;  %933 = vmatprep.mubr.f32.mxu0 %v4716_v0  ;;  %963 = vmatprep.mubr.f32.mxu1 %v4716_v0  ;;  %v795_v18 = vadd.f32 %v768_v43, %v631_v9  ;;  %vm693_vm7 = vcmp.eq.s32.totalorder %v3043_v16, %v3195_v42 }
  0x44   : > { %v778_v12 = vadd.f32 %v751_v10, %v614_v3  ;;  %v787_v17 = vadd.f32 %v760_v11, %v623_v7  ;;  %2712 = vmatpush1.bf16.msra.mxu1 %v2711_v5  ;;  %vm559_vm8 = vcmp.eq.s32.totalorder %v3043_v16, %v3112_v44  ;;  %vm696_vm10 = vcmp.eq.s32.totalorder %v3043_v16, %v3183_v33 }
  0x45   : > { %vm558_vm11 = vcmp.eq.s32.totalorder %v3043_v16, %v3209_v50  ;;  %2581 = vmatprep.subr.msk.mxu1 %vm829_vm9, %v795_v18  ;;  %v767_v45 = vsel %vm693_vm7, %v3124_v47, 0.0  ;;  %v633_v46 = vsel %vm559_vm8, %v3095_v38, 0.0  ;;  %v770_v29 = vsel %vm696_vm10, %v3099_v39, 0.0  ;;  %v3291_v47 = vld [vmem:[%s3172_s18 + $0x18] sm:$0xff]  ;;  %v3294_v38 = vld [vmem:[%s3172_s18 + $0x40] sm:$0xff]  ;;  %s2409_s18 = sshll.u32 %s380_s17, 4  ;;  %s4658_s18 = int_to_ptr.vmem [resolvable:$true] %s2409_s18 }
  0x46   : > { %v2715_v35 = vpack.c.bf16 %v787_v17, %v778_v12  ;;  %2574 = vmatmul.mubr.msk.f32.gmra.mrb[4].mxu0 %vm801_vm2, %v3265_v37  ;;  %2579 = vmatmul.mubr.msk.f32.gmra.mrb[4].mxu1 %vm801_vm2, %v3268_v60  ;;  %v794_v44 = vadd.f32 %v767_v45, %v630_v19  ;;  %v797_v30 = vadd.f32 %v770_v29, %v633_v46  ;;  %v632_v31 = vsel %vm558_vm11, %v3213_v51, 0.0  ;;  %s2826_s16 = scalar_lea.vmem %s4658_s18, 64  ;;  %p2833_p1 = scmp.lt.s32.totalorder %s4658_s18, %s2831_s30 }
  0x47   : > { %vm695_vm12 = vcmp.eq.s32.totalorder %v3043_v16, %v656_v4  ;;  %939 = vmatprep.mubr.f32.mxu0 %v4716_v0  ;;  %v3298_v33 = vrot.slane %v3087_v36, %v3060_v25  ;;  %v3302_v34 = vrot.slane %v3062_v26, %v3060_v25  ;;  %v3306_v40 = vrot.slane %v3131_v53, %v3060_v25  ;;  %p2827_p12 = scmp.ne.s32.totalorder %s4658_s18, %s2826_s16  ;;  %p2834_p2 = scmp.lt.s32.totalorder %s2832_s8, %s2826_s16 }
  0x48   : > { %2716 = vmatpush1.bf16.msra.mxu0 %v2715_v35  ;;  %v769_v39 = vsel %vm695_vm12, %v721_v8, 0.0  ;;  %969 = vmatprep.mubr.f32.mxu1 %v4716_v0  ;;  %v3312_v42 = vrot.slane %v3045_v20, %v3060_v25  ;;  %v3316_v50 = vrot.slane %v3087_v36, %v3065_v27  ;;  %vm3320_vm13 = vcmp.gt.s32.totalorder %v2749_v62, 0 }
  0x49   : > { %2582 = vmatpush1.msk.msra.mxu1 %vm829_vm9, %v794_v44  ;;  %v796_v41 = vadd.f32 %v769_v39, %v632_v31  ;;  %2592 = vmatprep.subr.msk.mxu0 %vm829_vm9, %v797_v30  ;;  %vm543_vm14 = vcmp.eq.s32.totalorder %v3030_v6, %v3298_v33  ;;  %vm552_vm15 = vcmp.eq.s32.totalorder %v3034_v13, %v3298_v33  ;;  %v475_v61 = vsel %vm3320_vm13, %v2749_v62, 0  ;;  %p2828_p13 = pnand %p2827_p12, %p2990_p4  ;;  %p2835_p3 = por %p2834_p2, %p2833_p1 }
  0x4a   : > { %vm680_vm0 = vcmp.eq.s32.totalorder %v3030_v6, %v3306_v40  ;;  %vm689_vm1 = vcmp.eq.s32.totalorder %v3034_v13, %v3306_v40  ;;  %2575 = vmatmul.mubr.msk.f32.gmra.mrb[6].mxu0 %vm801_vm2, %v3291_v47  ;;  %2580 = vmatmul.mubr.msk.f32.gmra.mrb[6].mxu1 %vm801_vm2, %v3294_v38  ;;  %v617_v36 = vsel %vm543_vm14, %v3302_v34, 0.0  ;;  %v626_v52 = vsel %vm552_vm15, %v3302_v34, 0.0 }
  0x4b   : > { %v754_v54 = vsel %vm680_vm0, %v3312_v42, 0.0  ;;  %v763_v55 = vsel %vm689_vm1, %v3312_v42, 0.0  ;;  %945 = vmatprep.mubr.f32.mxu0 %v4716_v0  ;;  %1040 = vmatprep.mubr.f32.mxu1 %v4716_v0  ;;  %vm542_vm3 = vcmp.eq.s32.totalorder %v3030_v6, %v3316_v50  ;;  %vm551_vm4 = vcmp.eq.s32.totalorder %v3034_v13, %v3316_v50  ;;  %p2829_p0 = pneg %p2828_p13 }
  0x4c   : > { %v781_v58 = vadd.f32 %v754_v54, %v617_v36  ;;  %v790_v59 = vadd.f32 %v763_v55, %v626_v52  ;;  %2593 = vmatpush1.msk.msra.mxu0 %vm829_vm9, %v796_v41  ;;  %v592_v2 = vrot.slane %v3062_v26, %v3065_v27  ;;  %v664_v3 = vrot.slane %v3131_v53, %v3065_v27 }
  0x4d   : > { %v729_v4 = vrot.slane %v3045_v20, %v3065_v27  ;;  %v4717_v7 = vmov 0.0|0.0   ;;  %vm478_vm5 = vcmp.lt.s32.totalorder %v475_v61, 17  ;;  %v491_v32 = vsub.f32 1.0, %v3067_v28  ;;  %p2836_p5 = pnand %p2835_p3, %p2829_p0 }
  0x4e   : > { %v2717_v5 = vpack.c.bf16 %v790_v59, %v781_v58  ;;  %2721 = vmatprep.subr.bf16.mxu0 %v4717_v7  ;;  %v495_v62 = vmul.f32 %v3067_v28, %v432_v56  ;;  %2576 = vmatmul.mubr.msk.f32.gmra.mrb[8].mxu0 %vm801_vm2, %v3345_v57  ;;  %v616_v26 = vsel %vm542_vm3, %v592_v2, 0.0  ;;  %v625_v53 = vsel %vm551_vm4, %v592_v2, 0.0 }
  0x4f   : > { %2583 = vmatmul.mubr.msk.f32.vlgmr.msra.gmra.mrb[8].mxu1 %vm801_vm2, %v3198_v48  ;;  %vm679_vm6 = vcmp.eq.s32.totalorder %v3030_v6, %v664_v3  ;;  %vm688_vm7 = vcmp.eq.s32.totalorder %v3034_v13, %v664_v3  ;;  %1159 = vmatprep.mubr.f32.mxu0 %v4716_v0  ;;  %v479_v9 = vsel %vm478_vm5, %v475_v61, 17  ;;  %v493_v28 = vmul.f32 %v491_v32, %v432_v56 }
  0x50   : > { %1046 = vmatprep.mubr.f32.mxu1 %v4716_v0  ;;  %v753_v20 = vsel %vm679_vm6, %v729_v4, 0.0  ;;  %v762_v8 = vsel %vm688_vm7, %v729_v4, 0.0  ;;  %2718 = vmatprep.subr.bf16.mxu1 %v2717_v5  ;;  %v481_v43 = vadd.s32 1, %v479_v9  ;;  %v535_v12 = vrot.slane %v479_v9, %v3040_v15 }
  0x51   : > { %v780_v10 = vadd.f32 %v753_v20, %v616_v26  ;;  %v789_v11 = vadd.f32 %v762_v8, %v625_v53  ;;  %vm561_vm8 = vcmp.eq.s32.totalorder %v3043_v16, %v3298_v33  ;;  %vm698_vm10 = vcmp.eq.s32.totalorder %v3043_v16, %v3306_v40 }
  0x52   : > { %2594 = vmatmul.mubr.msk.f32.vlgmr.msra.gmra.mrb[10].mxu0 %vm801_vm2, %v3198_v48  ;;  %vm484_vm11 = vcmp.gt.s32.totalorder %v481_v43, 0  ;;  %v600_v18 = vrot.slane %v493_v28, %v3040_v15  ;;  %v737_v19 = vrot.slane %v495_v62, %v3040_v15  ;;  %vm544_vm12 = vcmp.eq.s32.totalorder %v3030_v6, %v535_v12 }
  0x53   : > { %2584 = vmatmul.mubr.msk.f32.gmra.mrb[10].mxu1 %vm801_vm2, %v3235_v63  ;;  %v2719_v17 = vpack.c.bf16 %v789_v11, %v780_v10  ;;  %1165 = vmatprep.mubr.f32.mxu0 %v4716_v0  ;;  %v485_v35 = vsel %vm484_vm11, %v481_v43, 0  ;;  %vm553_vm13 = vcmp.eq.s32.totalorder %v3034_v13, %v535_v12  ;;  %v635_v45 = vsel %vm561_vm8, %v3302_v34, 0.0 }
  0x54   : > { %1052 = vmatprep.mubr.f32.mxu1 %v4716_v0  ;;  %vm488_vm14 = vcmp.lt.s32.totalorder %v485_v35, 17  ;;  %v772_v46 = vsel %vm698_vm10, %v3312_v42, 0.0  ;;  %vm560_vm15 = vcmp.eq.s32.totalorder %v3043_v16, %v3316_v50  ;;  %vm697_vm0 = vcmp.eq.s32.totalorder %v3043_v16, %v664_v3 }
  0x55   : > { %2720 = vmatpush1.bf16.msra.mxu1 %v2719_v17  ;;  %v489_v29 = vsel %vm488_vm14, %v485_v35, 17  ;;  %v799_v44 = vadd.f32 %v772_v46, %v635_v45  ;;  %v634_v30 = vsel %vm560_vm15, %v592_v2, 0.0  ;;  %v771_v31 = vsel %vm697_vm0, %v729_v4, 0.0 }
  0x56   : > { %2595 = vmatmul.mubr.msk.f32.gmra.mrb[12].mxu0 %vm801_vm2, %v3235_v63  ;;  %v672_v39 = vrot.slane %v489_v29, %v3040_v15  ;;  %v798_v33 = vadd.f32 %v771_v31, %v634_v30  ;;  %v618_v34 = vsel %vm544_vm12, %v600_v18, 0.0  ;;  %v627_v40 = vsel %vm553_vm13, %v600_v18, 0.0 }
  0x57   : > { %2585 = vmatmul.mubr.msk.f32.gmra.mrb[12].mxu1 %vm801_vm2, %v3265_v37  ;;  %1171 = vmatprep.mubr.f32.mxu0 %v4716_v0  ;;  %vm562_vm4 = vcmp.eq.s32.totalorder %v3043_v16, %v535_v12  ;;  %v1445_v58 = vadd.s32 40, %v3030_v6  ;;  %v1446_v32 = vadd.s32 48, %v3030_v6 }
  0x58   : > { %1058 = vmatprep.mubr.f32.mxu1 %v4716_v0  ;;  %vm681_vm1 = vcmp.eq.s32.totalorder %v3030_v6, %v672_v39  ;;  %vm690_vm3 = vcmp.eq.s32.totalorder %v3034_v13, %v672_v39  ;;  %2603 = vmatprep.subr.msk.mxu1 %vm829_vm9, %v799_v44  ;;  %vm699_vm5 = vcmp.eq.s32.totalorder %v3043_v16, %v672_v39  ;;  %v636_v36 = vsel %vm562_vm4, %v600_v18, 0.0 }
  0x59   : > { %v755_v41 = vsel %vm681_vm1, %v737_v19, 0.0  ;;  %v764_v42 = vsel %vm690_vm3, %v737_v19, 0.0  ;;  %2604 = vmatpush1.msk.msra.mxu1 %vm829_vm9, %v798_v33  ;;  %v773_v52 = vsel %vm699_vm5, %v737_v19, 0.0  ;;  %v3555_v19 = vadd.s32 56, %v3030_v6 }
  0x5a   : > { %2596 = vmatmul.mubr.msk.f32.gmra.mrb[14].mxu0 %vm801_vm2, %v3265_v37  ;;  %v782_v50 = vadd.f32 %v755_v41, %v618_v34  ;;  %v791_v51 = vadd.f32 %v764_v42, %v627_v40  ;;  %2724 = vmatprep.subr.bf16.mxu1 %v4717_v7  ;;  %v800_v55 = vadd.f32 %v773_v52, %v636_v36  ;;  %v3574_v34 = vadd.s32 24, %v3030_v6 }
  0x5b   : > { %2586 = vmatmul.mubr.msk.f32.gmra.mrb[14].mxu1 %vm801_vm2, %v3291_v47  ;;  %1177 = vmatprep.mubr.f32.mxu0 %v4716_v0  ;;  %v3530_v59 = vmul.u32.u64.low 3817748708, %v1445_v58  ;;  %v3531_v61 = vmul.u32.u64.high 3817748708, %v1445_v58, %v3530_v59  ;;  %v3540_v62 = vmul.u32.u64.low 3817748708, %v3034_v13  ;;  %v3541_v26 = vmul.u32.u64.high 3817748708, %v3034_v13, %v3540_v62 }
  0x5c   : > { %1064 = vmatprep.mubr.f32.mxu1 %v4716_v0  ;;  %v2722_v54 = vpack.c.bf16 %v791_v51, %v782_v50  ;;  %v3544_v8 = vmul.u32.u64.low 3817748708, %v1446_v32  ;;  %v3545_v9 = vmul.u32.u64.high 3817748708, %v1446_v32, %v3544_v8  ;;  %v3590_v36 = vadd.s32 64, %v3030_v6 }
  0x5d   : > { %v1510_v5 = vshrl.u32 %v3531_v61, 4  ;;  %v3550_v12 = vmul.u32.u64.low 3817748708, %v3043_v16  ;;  %v3551_v17 = vmul.u32.u64.high 3817748708, %v3043_v16, %v3550_v12  ;;  %v1466_v18 = vshrl.u32 %v3541_v26, 4 }
  0x5e   : > { %2723 = vmatpush3.bf16.msra.mxu0 %v2722_v54  ;;  %v1521_v35 = vshrl.u32 %v3545_v9, 4  ;;  %v3570_v39 = vmul.u32.u64.low 3817748708, %v3555_v19  ;;  %v3571_v33 = vmul.u32.u64.high 3817748708, %v3555_v19, %v3570_v39 }
  0x5f   : > { %2587 = vmatmul.mubr.msk.f32.gmra.mrb[16].mxu1 %vm801_vm2, %v3345_v57  ;;  %2597 = vmatmul.mubr.msk.f32.gmra.mrb[16].mxu0 %vm801_vm2, %v3291_v47  ;;  %v1511_v20 = vmul.u32 18, %v1510_v5  ;;  %v1467_v31 = vmul.u32 18, %v1466_v18  ;;  %v1477_v51 = vshrl.u32 %v3551_v17, 4 }
  0x60   : > { %1070 = vmatprep.mubr.f32.mxu1 %v4716_v0  ;;  %1183 = vmatprep.mubr.f32.mxu0 %v4716_v0  ;;  %v1522_v41 = vmul.u32 18, %v1521_v35 }
  0x61   : > { %2655 = vmatprep.subr.mxu0 %v4716_v0  ;;  %v1512_v10 = vsub.s32 %v1445_v58, %v1511_v20  ;;  %v1468_v52 = vsub.s32 %v3034_v13, %v1467_v31  ;;  %v3622_v58 = vadd.s32 32, %v3030_v6 }
  0x62   : > { %2656 = vmatpush3.msk.msra.mxu0 %vm829_vm9, %v800_v55  ;;  %vm2908_vm9 = vmmov 0   ;;  %v3594_v54 = vmul.u32.u64.low 3817748708, %v3574_v34  ;;  %v3595_v55 = vmul.u32.u64.high 3817748708, %v3574_v34, %v3594_v54 }
  0x63   : > { %2588 = vmatmul.mubr.msk.f32.gmra.mrb[18].mxu1 %vm801_vm2, %v3201_v49  ;;  %2598 = vmatmul.mubr.msk.f32.gmra.mrb[18].mxu0 %vm801_vm2, %v3345_v57  ;;  %vm1553_vm13 = vcmp.ne.s32.totalorder %v1512_v10, 0  ;;  %vm1562_vm14 = vcmp.lt.s32.totalorder %v1512_v10, 0  ;;  %v1580_v30 = vadd.s32 18, %v1512_v10  ;;  %vm1549_vm5 = vcmp.ne.s32.totalorder %v1468_v52, 0 }
  0x64   : > { %1076 = vmatprep.mubr.f32.mxu1 %v4716_v0  ;;  %1189 = vmatprep.mubr.f32.mxu0 %v4716_v0  ;;  %vm1571_vm15 = vmand %vm1562_vm14, %vm1553_vm13  ;;  %v1488_v62 = vshrl.u32 %v3595_v55, 4 }
  0x65   : > { %v3586_v50 = vsel %vm1571_vm15, %v1580_v30, %v1512_v10 }
  0x66   : > { %4741 = vst [vmem:[#allocation6_spill] sm:$0xff] %v3586_v50  ;;  %v1489_v12 = vmul.u32 18, %v1488_v62 }
  0x67   : > { %2589 = vmatmul.mubr.msk.f32.gmra.mrb[20].mxu1 %vm801_vm2, %v3238_v1  ;;  %2599 = vmatmul.mubr.msk.f32.gmra.mrb[20].mxu0 %vm801_vm2, %v3201_v49 }
  0x68   : > { %1082 = vmatprep.mubr.f32.mxu1 %v4716_v0  ;;  %1195 = vmatprep.mubr.f32.mxu0 %v4716_v0  ;;  %v1490_v31 = vsub.s32 %v3574_v34, %v1489_v12 }
  0x6b   : > { %2590 = vmatmul.mubr.msk.f32.gmra.mrb[22].mxu1 %vm801_vm2, %v3268_v60  ;;  %2600 = vmatmul.mubr.msk.f32.gmra.mrb[22].mxu0 %vm801_vm2, %v3238_v1 }
  0x6c   : > { %1088 = vmatprep.mubr.f32.mxu1 %v4716_v0  ;;  %1201 = vmatprep.mubr.f32.mxu0 %v4716_v0 }
  0x6f   : > { %2591 = vmatmul.mubr.msk.f32.gmra.mrb[24].mxu1 %vm801_vm2, %v3294_v38  ;;  %2601 = vmatmul.mubr.msk.f32.gmra.mrb[24].mxu0 %vm801_vm2, %v3268_v60 }
  0x70   : > { %1278 = vmatprep.mubr.f32.mxu1 %v4716_v0  ;;  %1207 = vmatprep.mubr.f32.mxu0 %v4716_v0 }
  0x73   : > { %2605 = vmatmul.mubr.msk.f32.vlgmr.msra.gmra.mrb[26].mxu1 %vm801_vm2, %v3198_v48  ;;  %2602 = vmatmul.mubr.msk.f32.gmra.mrb[26].mxu0 %vm801_vm2, %v3294_v38 }
  0x74   : > { %1284 = vmatprep.mubr.f32.mxu1 %v4716_v0  ;;  %2657 = vmatprep.mubr.msk.f32.mxu0 %vm2908_vm9, %v4716_v0 }
  0x77   : > { %2606 = vmatmul.mubr.msk.f32.gmra.mrb[28].mxu1 %vm801_vm2, %v3235_v63  ;;  %2658 = vmatmul.mubr.msk.f32.vlgmr.msra.gmra.mrb[28].mxu0 %vm801_vm2, %v3198_v48  ;;  %v418_v48 = vld [vmem:[%s4708_s0] sm:$0xff] }
  0x78   : > { %1290 = vmatprep.mubr.f32.mxu1 %v4716_v0  ;;  %2660 = vmatprep.mubr.msk.f32.mxu0 %vm2908_vm9, %v4716_v0 }
  0x7b   : > { %2607 = vmatmul.mubr.msk.f32.gmra.mrb[30].mxu1 %vm801_vm2, %v3265_v37  ;;  %2661 = vmatmul.mubr.msk.f32.gmra.mrb[30].mxu0 %vm801_vm2, %v3235_v63  ;;  %v433_v63 = vld [vmem:[%s3497_s21] sm:$0xff] }
  0x7c   : > { %1296 = vmatprep.mubr.f32.mxu1 %v4716_v0  ;;  %2663 = vmatprep.mubr.msk.f32.mxu0 %vm2908_vm9, %v4716_v0 }
  0x7f   : > { %2608 = vmatmul.mubr.msk.f32.gmra.mrb[32].mxu1 %vm801_vm2, %v3291_v47  ;;  %2664 = vmatmul.mubr.msk.f32.gmra.mrb[32].mxu0 %vm801_vm2, %v3265_v37 }
  0x80   : > { %1302 = vmatprep.mubr.f32.mxu1 %v4716_v0  ;;  %2666 = vmatprep.mubr.msk.f32.mxu0 %vm2908_vm9, %v4716_v0 }
  0x83   : > { %2609 = vmatmul.mubr.msk.f32.gmra.mrb[34].mxu1 %vm801_vm2, %v3345_v57  ;;  %2667 = vmatmul.mubr.msk.f32.gmra.mrb[34].mxu0 %vm801_vm2, %v3291_v47 }
  0x84   : > { %1308 = vmatprep.mubr.f32.mxu1 %v4716_v0  ;;  %2669 = vmatprep.mubr.msk.f32.mxu0 %vm2908_vm9, %v4716_v0 }
  0x87   : > { %2610 = vmatmul.mubr.msk.f32.gmra.mrb[36].mxu1 %vm801_vm2, %v3201_v49  ;;  %2670 = vmatmul.mubr.msk.f32.gmra.mrb[36].mxu0 %vm801_vm2, %v3345_v57  ;;  %v3526_v56 = vmul.u32.u64.low 3817748708, %v3030_v6  ;;  %v3527_v57 = vmul.u32.u64.high 3817748708, %v3030_v6, %v3526_v56 }
  0x88   : > { %1314 = vmatprep.mubr.f32.mxu1 %v4716_v0  ;;  %2672 = vmatprep.mubr.msk.f32.mxu0 %vm2908_vm9, %v4716_v0 }
  0x89   : > { %v1455_v3 = vshrl.u32 %v3527_v57, 4  ;;  %v1532_v57 = vshrl.u32 %v3571_v33, 4 }
  0x8b   : > { %2611 = vmatmul.mubr.msk.f32.gmra.mrb[38].mxu1 %vm801_vm2, %v3238_v1  ;;  %2673 = vmatmul.mubr.msk.f32.gmra.mrb[38].mxu0 %vm801_vm2, %v3201_v49  ;;  %v438_v49 = vadd.f32 %v433_v63, %v418_v48  ;;  %v1456_v4 = vmul.u32 18, %v1455_v3  ;;  %v1523_v63 = vsub.s32 %v1446_v32, %v1522_v41  ;;  %v1533_v32 = vmul.u32 18, %v1532_v57 }
  0x8c   : > { %1320 = vmatprep.mubr.f32.mxu1 %v4716_v0  ;;  %2675 = vmatprep.mubr.msk.f32.mxu0 %vm2908_vm9, %v4716_v0 }
  0x8d   : > { %v442_v37 = vfloor.f32 %v438_v49  ;;  %v1457_v53 = vsub.s32 %v3030_v6, %v1456_v4  ;;  %v1581_v4 = vadd.s32 18, %v1523_v63 }
  0x8f   : > { %2612 = vmatmul.mubr.msk.f32.gmra.mrb[40].mxu1 %vm801_vm2, %v3268_v60  ;;  %2676 = vmatmul.mubr.msk.f32.gmra.mrb[40].mxu0 %vm801_vm2, %v3238_v1  ;;  %v2742_v1 = vtrunc.f32 %v442_v37  ;;  %vm1548_vm8 = vcmp.ne.s32.totalorder %v1457_v53, 0  ;;  %vm1557_vm10 = vcmp.lt.s32.totalorder %v1457_v53, 0  ;;  %v3547_v11 = vsub.f32 %v438_v49, %v442_v37 }
  0x90   : > { %1326 = vmatprep.mubr.f32.mxu1 %v4716_v0  ;;  %2678 = vmatprep.mubr.msk.f32.mxu0 %vm2908_vm9, %v4716_v0  ;;  %v1575_v43 = vadd.s32 18, %v1457_v53  ;;  %vm1566_vm12 = vmand %vm1557_vm10, %vm1548_vm8 }
  0x91   : > { %v2743_v47 = vcvt.f32.s32 %v2742_v1  ;;  %v3561_v46 = vsub.f32 1.0, %v3547_v11  ;;  %v3601_v48 = vrot.slane %v3547_v11, %v3040_v15  ;;  %v1478_v1 = vmul.u32 18, %v1477_v51 }
  0x92   : > { %v3563_v29 = vsel %vm1566_vm12, %v1575_v43, %v1457_v53  ;;  %v3634_v3 = vrot.slane %v3547_v11, %v3037_v14  ;;  %v1534_v43 = vsub.s32 %v3555_v19, %v1533_v32 }
  0x93   : > { %2613 = vmatmul.mubr.msk.f32.gmra.mrb[42].mxu1 %vm801_vm2, %v3294_v38  ;;  %2679 = vmatmul.mubr.msk.f32.gmra.mrb[42].mxu0 %vm801_vm2, %v3268_v60  ;;  %vm452_vm6 = vcmp.gt.s32.totalorder %v2743_v47, 0  ;;  %v3582_v42 = vrot.slane %v3561_v46, %v3040_v15  ;;  %v3627_v59 = vrot.slane %v3561_v46, %v3037_v14  ;;  %v1479_v5 = vsub.s32 %v3043_v16, %v1478_v1 }
  0x94   : > { %2681 = vmatprep.mubr.msk.f32.mxu0 %vm2908_vm9, %v4716_v0  ;;  %2702 = vmatprep.mubr.msk.f32.mxu1 %vm2908_vm9, %v4716_v0  ;;  %v453_v60 = vsel %vm452_vm6, %v2743_v47, 0  ;;  %v3617_v47 = vmul.u32.u64.low 3817748708, %v3590_v36  ;;  %v3618_v56 = vmul.u32.u64.high 3817748708, %v3590_v36, %v3617_v47  ;;  %vm1558_vm9 = vcmp.lt.s32.totalorder %v1468_v52, 0 }
  0x95   : > { %vm456_vm7 = vcmp.lt.s32.totalorder %v453_v60, 17  ;;  %vm1554_vm6 = vcmp.ne.s32.totalorder %v1523_v63, 0  ;;  %vm1567_vm10 = vmand %vm1558_vm9, %vm1549_vm5  ;;  %vm1550_vm14 = vcmp.ne.s32.totalorder %v1479_v5, 0  ;;  %vm1559_vm15 = vcmp.lt.s32.totalorder %v1479_v5, 0 }
  0x96   : > { %v3533_v2 = vsel %vm456_vm7, %v453_v60, 17  ;;  %vm1563_vm7 = vcmp.lt.s32.totalorder %v1523_v63, 0  ;;  %v1543_v10 = vshrl.u32 %v3618_v56, 4  ;;  %v1577_v19 = vadd.s32 18, %v1479_v5 }
  0x97   : > { %2682 = vmatmul.mubr.msk.f32.gmra.mrb[44].mxu0 %vm801_vm2, %v3294_v38  ;;  %v460_v38 = vadd.s32 1, %v3533_v2  ;;  %v3567_v44 = vrot.slane %v3533_v2, %v3040_v15  ;;  %v3610_v13 = vrot.slane %v3533_v2, %v3037_v14  ;;  %v1582_v55 = vadd.s32 18, %v1534_v43 }
  0x98   : > { %v1544_v30 = vmul.u32 18, %v1543_v10  ;;  %v3738_v32 = vrot.slane %v3561_v46, %v3054_v23 }
  0x99   : > { %vm462_vm2 = vcmp.gt.s32.totalorder %v460_v38, 0  ;;  %vm1629_vm0 = vcmp.eq.s32.totalorder %v3563_v29, %v3567_v44  ;;  %vm1674_vm3 = vcmp.eq.s32.totalorder %v3586_v50, %v3567_v44  ;;  %vm1675_vm12 = vcmp.eq.s32.totalorder %v3586_v50, %v3610_v13 }
  0x9a   : > { %v463_v28 = vsel %vm462_vm2, %v460_v38, 0  ;;  %v1759_v49 = vsel %vm1629_vm0, %v3582_v42, 0.0  ;;  %v1804_v61 = vsel %vm1674_vm3, %v3582_v42, 0.0  ;;  %vm1630_vm2 = vcmp.eq.s32.totalorder %v3563_v29, %v3610_v13 }
  0x9b   : > { %vm466_vm11 = vcmp.lt.s32.totalorder %v463_v28, 17  ;;  %v1576_v38 = vadd.s32 18, %v1468_v52  ;;  %v1760_v53 = vsel %vm1630_vm2, %v3627_v59, 0.0  ;;  %v1805_v18 = vsel %vm1675_vm12, %v3627_v59, 0.0 }
  0x9c   : > { %v3558_v45 = vsel %vm466_vm11, %v463_v28, 17  ;;  %vm1572_vm11 = vmand %vm1563_vm7, %vm1554_vm6  ;;  %vm1555_vm2 = vcmp.ne.s32.totalorder %v1534_v43, 0  ;;  %v1545_v47 = vsub.s32 %v3590_v36, %v1544_v30  ;;  %vm1551_vm12 = vcmp.ne.s32.totalorder %v1490_v31, 0 }
  0x9d   : > { %v3578_v40 = vrot.slane %v3558_v45, %v3040_v15  ;;  %v3614_v37 = vrot.slane %v3558_v45, %v3037_v14  ;;  %v3646_v14 = vmul.u32.u64.low 3817748708, %v3622_v58  ;;  %v3647_v26 = vmul.u32.u64.high 3817748708, %v3622_v58, %v3646_v14  ;;  %vm1568_vm7 = vmand %vm1559_vm15, %vm1550_vm14 }
  0x9e   : > { %v3655_v8 = vsel %vm1567_vm10, %v1576_v38, %v1468_v52  ;;  %v3661_v28 = vsel %vm1572_vm11, %v1581_v4, %v1523_v63  ;;  %v3701_v54 = vsel %vm1568_vm7, %v1577_v19, %v1479_v5  ;;  %v1578_v36 = vadd.s32 18, %v1490_v31 }
  0x9f   : > { %vm1876_vm1 = vcmp.eq.s32.totalorder %v3563_v29, %v3578_v40  ;;  %vm1921_vm4 = vcmp.eq.s32.totalorder %v3586_v50, %v3578_v40  ;;  %vm1877_vm8 = vcmp.eq.s32.totalorder %v3563_v29, %v3614_v37  ;;  %vm1922_vm13 = vcmp.eq.s32.totalorder %v3586_v50, %v3614_v37  ;;  %4742 = vst [vmem:[#allocation7_spill] sm:$0xff] %v3655_v8 }
  0xa0   : > { %v2004_v60 = vsel %vm1876_vm1, %v3601_v48, 0.0  ;;  %v2049_v6 = vsel %vm1921_vm4, %v3601_v48, 0.0  ;;  %v2005_v20 = vsel %vm1877_vm8, %v3634_v3, 0.0  ;;  %4743 = vst [vmem:[#allocation8_spill] sm:$0xff] %v3661_v28  ;;  %v2050_v35 = vsel %vm1922_vm13, %v3634_v3, 0.0 }
  0xa1   : > { %v3657_v16 = vadd.f32 %v2004_v60, %v1759_v49  ;;  %v3659_v9 = vadd.f32 %v2049_v6, %v1804_v61  ;;  %v3665_v17 = vadd.f32 %v2005_v20, %v1760_v53  ;;  %vm1638_vm0 = vcmp.eq.s32.totalorder %v3655_v8, %v3567_v44 }
  0xa2   : > { %vm1885_vm1 = vcmp.eq.s32.totalorder %v3655_v8, %v3578_v40  ;;  %vm1639_vm3 = vcmp.eq.s32.totalorder %v3655_v8, %v3610_v13  ;;  %vm1886_vm4 = vcmp.eq.s32.totalorder %v3655_v8, %v3614_v37  ;;  %vm1683_vm5 = vcmp.eq.s32.totalorder %v3661_v28, %v3567_v44 }
  0xa3   : > { %vm1930_vm9 = vcmp.eq.s32.totalorder %v3661_v28, %v3578_v40  ;;  %vm1684_vm6 = vcmp.eq.s32.totalorder %v3661_v28, %v3610_v13  ;;  %vm1564_vm8 = vcmp.lt.s32.totalorder %v1534_v43, 0  ;;  %v1499_v39 = vshrl.u32 %v3647_v26, 4 }
  0xa4   : > { %v3687_v33 = vadd.f32 %v2050_v35, %v1805_v18  ;;  %v1768_v41 = vsel %vm1638_vm0, %v3582_v42, 0.0  ;;  %v2013_v51 = vsel %vm1885_vm1, %v3601_v48, 0.0  ;;  %vm1931_vm10 = vcmp.eq.s32.totalorder %v3661_v28, %v3614_v37  ;;  %vm1573_vm11 = vmand %vm1564_vm8, %vm1555_vm2 }
  0xa5   : > { %v1769_v52 = vsel %vm1639_vm3, %v3627_v59, 0.0  ;;  %v2014_v34 = vsel %vm1886_vm4, %v3634_v3, 0.0  ;;  %v1813_v63 = vsel %vm1683_vm5, %v3582_v42, 0.0  ;;  %v2058_v49 = vsel %vm1930_vm9, %v3601_v48, 0.0 }
  0xa6   : > { %v1814_v1 = vsel %vm1684_vm6, %v3627_v59, 0.0  ;;  %v2059_v56 = vsel %vm1931_vm10, %v3634_v3, 0.0  ;;  %vm1560_vm13 = vcmp.lt.s32.totalorder %v1490_v31, 0  ;;  %v1500_v57 = vmul.u32 18, %v1499_v39 }
  0xa7   : > { %v3718_v60 = vadd.f32 %v2013_v51, %v1768_v41  ;;  %v3720_v61 = vadd.f32 %v2014_v34, %v1769_v52  ;;  %vm1647_vm14 = vcmp.eq.s32.totalorder %v3701_v54, %v3567_v44  ;;  %vm1894_vm15 = vcmp.eq.s32.totalorder %v3701_v54, %v3578_v40  ;;  %vm1569_vm0 = vmand %vm1560_vm13, %vm1551_vm12 }
  0xa8   : > { %v3726_v38 = vadd.f32 %v2058_v49, %v1813_v63  ;;  %v3728_v6 = vsel %vm1573_vm11, %v1582_v55, %v1534_v43  ;;  %v3732_v4 = vrot.slane %v3533_v2, %v3054_v23  ;;  %v3734_v5 = vadd.f32 %v2059_v56, %v1814_v1 }
  0xa9   : > { %4744 = vst [vmem:[#allocation9_spill] sm:$0xff] %v3728_v6  ;;  %vm1556_vm1 = vcmp.ne.s32.totalorder %v1545_v47, 0  ;;  %vm1565_vm3 = vcmp.lt.s32.totalorder %v1545_v47, 0  ;;  %v1777_v62 = vsel %vm1647_vm14, %v3582_v42, 0.0  ;;  %v2022_v14 = vsel %vm1894_vm15, %v3601_v48, 0.0 }
  0xaa   : > { %vm1648_vm4 = vcmp.eq.s32.totalorder %v3701_v54, %v3610_v13  ;;  %v1501_v26 = vsub.s32 %v3622_v58, %v1500_v57  ;;  %vm1692_vm5 = vcmp.eq.s32.totalorder %v3728_v6, %v3567_v44  ;;  %vm1895_vm9 = vcmp.eq.s32.totalorder %v3701_v54, %v3614_v37  ;;  %vm1574_vm7 = vmand %vm1565_vm3, %vm1556_vm1 }
  0xab   : > { %v1583_v53 = vadd.s32 18, %v1545_v47  ;;  %v3751_v20 = vrot.slane %v3558_v45, %v3054_v23  ;;  %vm1939_vm6 = vcmp.eq.s32.totalorder %v3728_v6, %v3578_v40  ;;  %v3755_v10 = vsel %vm1569_vm0, %v1578_v36, %v1490_v31 }
  0xac   : > { %4745 = vst [vmem:[#allocation10_spill] sm:$0xff] %v3755_v10  ;;  %vm1631_vm2 = vcmp.eq.s32.totalorder %v3563_v29, %v3732_v4  ;;  %v3761_v58 = vrot.slane %v3547_v11, %v3054_v23  ;;  %v3763_v43 = vadd.f32 %v2022_v14, %v1777_v62  ;;  %v1778_v12 = vsel %vm1648_vm4, %v3627_v59, 0.0 }
  0xad   : > { %vm1693_vm8 = vcmp.eq.s32.totalorder %v3728_v6, %v3610_v13  ;;  %vm1940_vm10 = vcmp.eq.s32.totalorder %v3728_v6, %v3614_v37  ;;  %v1822_v18 = vsel %vm1692_vm5, %v3582_v42, 0.0  ;;  %v2023_v35 = vsel %vm1895_vm9, %v3634_v3, 0.0 }
  0xae   : > { %vm1552_vm11 = vcmp.ne.s32.totalorder %v1501_v26, 0  ;;  %vm1561_vm12 = vcmp.lt.s32.totalorder %v1501_v26, 0  ;;  %v2067_v19 = vsel %vm1939_vm6, %v3601_v48, 0.0  ;;  %vm1656_vm13 = vcmp.eq.s32.totalorder %v3755_v10, %v3567_v44 }
  0xaf   : > { %vm1903_vm14 = vcmp.eq.s32.totalorder %v3755_v10, %v3578_v40  ;;  %v3777_v23 = vsel %vm1574_vm7, %v1583_v53, %v1545_v47  ;;  %v1823_v30 = vsel %vm1693_vm8, %v3627_v59, 0.0  ;;  %v2068_v31 = vsel %vm1940_vm10, %v3634_v3, 0.0  ;;  %vm1570_vm3 = vmand %vm1561_vm12, %vm1552_vm11 }
  0xb0   : > { %4746 = vst [vmem:[#allocation11_spill] sm:$0xff] %v3777_v23  ;;  %v1579_v39 = vadd.s32 18, %v1501_v26  ;;  %vm1878_vm15 = vcmp.eq.s32.totalorder %v3563_v29, %v3751_v20  ;;  %v3783_v41 = vadd.f32 %v2023_v35, %v1778_v12  ;;  %vm1657_vm0 = vcmp.eq.s32.totalorder %v3755_v10, %v3610_v13 }
  0xb1   : > { %vm1904_vm1 = vcmp.eq.s32.totalorder %v3755_v10, %v3614_v37  ;;  %v3791_v51 = vrot.slane %v3533_v2, %v3048_v21  ;;  %v1786_v52 = vsel %vm1656_vm13, %v3582_v42, 0.0  ;;  %v2031_v34 = vsel %vm1903_vm14, %v3601_v48, 0.0 }
  0xb2   : > { %vm1701_vm4 = vcmp.eq.s32.totalorder %v3777_v23, %v3567_v44  ;;  %vm1948_vm5 = vcmp.eq.s32.totalorder %v3777_v23, %v3578_v40  ;;  %v3799_v55 = vadd.f32 %v2067_v19, %v1822_v18  ;;  %v3801_v63 = vadd.f32 %v2068_v31, %v1823_v30 }
  0xb3   : > { %v1761_v49 = vsel %vm1631_vm2, %v3738_v32, 0.0  ;;  %v2006_v1 = vsel %vm1878_vm15, %v3761_v58, 0.0  ;;  %v1787_v47 = vsel %vm1657_vm0, %v3627_v59, 0.0  ;;  %v3809_v56 = vsel %vm1570_vm3, %v1579_v39, %v1501_v26 }
  0xb4   : > { %4747 = vst [vmem:[#allocation12_spill] sm:$0xff] %v3809_v56  ;;  %v3813_v57 = vrot.slane %v3561_v46, %v3048_v21  ;;  %v3817_v36 = vrot.slane %v3558_v45, %v3048_v21  ;;  %v3819_v62 = vadd.f32 %v2031_v34, %v1786_v52  ;;  %v1831_v14 = vsel %vm1701_vm4, %v3582_v42, 0.0 }
  0xb5   : > { %v2076_v53 = vsel %vm1948_vm5, %v3601_v48, 0.0  ;;  %v2032_v26 = vsel %vm1904_vm1, %v3634_v3, 0.0  ;;  %vm1702_vm9 = vcmp.eq.s32.totalorder %v3777_v23, %v3610_v13  ;;  %vm1949_vm6 = vcmp.eq.s32.totalorder %v3777_v23, %v3614_v37 }
  0xb6   : > { %vm1632_vm7 = vcmp.eq.s32.totalorder %v3563_v29, %v3791_v51  ;;  %v3835_v12 = vrot.slane %v3547_v11, %v3048_v21  ;;  %vm1665_vm2 = vcmp.eq.s32.totalorder %v3809_v56, %v3567_v44  ;;  %vm1912_vm8 = vcmp.eq.s32.totalorder %v3809_v56, %v3578_v40 }
  0xb7   : > { %vm1666_vm10 = vcmp.eq.s32.totalorder %v3809_v56, %v3610_v13  ;;  %vm1913_vm11 = vcmp.eq.s32.totalorder %v3809_v56, %v3614_v37  ;;  %vm1879_vm12 = vcmp.eq.s32.totalorder %v3563_v29, %v3817_v36  ;;  %vm1640_vm13 = vcmp.eq.s32.totalorder %v3655_v8, %v3732_v4 }
  0xb8   : > { %vm1887_vm14 = vcmp.eq.s32.totalorder %v3655_v8, %v3751_v20  ;;  %v3853_v21 = vrot.slane %v3533_v2, %v3057_v24  ;;  %v3855_v44 = vadd.f32 %v2032_v26, %v1787_v47  ;;  %v1832_v40 = vsel %vm1702_vm9, %v3627_v59, 0.0 }
  0xb9   : > { %v2077_v13 = vsel %vm1949_vm6, %v3634_v3, 0.0  ;;  %v1762_v37 = vsel %vm1632_vm7, %v3813_v57, 0.0  ;;  %v1795_v18 = vsel %vm1665_vm2, %v3582_v42, 0.0  ;;  %v2040_v35 = vsel %vm1912_vm8, %v3601_v48, 0.0 }
  0xba   : > { %v1796_v19 = vsel %vm1666_vm10, %v3627_v59, 0.0  ;;  %v2041_v30 = vsel %vm1913_vm11, %v3634_v3, 0.0  ;;  %v2007_v31 = vsel %vm1879_vm12, %v3835_v12, 0.0  ;;  %v1770_v39 = vsel %vm1640_vm13, %v3738_v32, 0.0 }
  0xbb   : > { %v2015_v52 = vsel %vm1887_vm14, %v3761_v58, 0.0  ;;  %v3869_v34 = vrot.slane %v3561_v46, %v3057_v24  ;;  %v3871_v47 = vadd.f32 %v2076_v53, %v1831_v14  ;;  %vm1633_vm15 = vcmp.eq.s32.totalorder %v3563_v29, %v3853_v21 }
  0xbc   : > { %v3877_v42 = vrot.slane %v3558_v45, %v3057_v24  ;;  %v3881_v48 = vrot.slane %v3533_v2, %v3051_v22  ;;  %v3883_v59 = vadd.f32 %v2077_v13, %v1832_v40  ;;  %v3885_v3 = vadd.f32 %v2006_v1, %v1761_v49 }
  0xbd   : > { %vm1641_vm0 = vcmp.eq.s32.totalorder %v3655_v8, %v3791_v51  ;;  %v3891_v14 = vrot.slane %v3558_v45, %v3051_v22  ;;  %v3893_v53 = vadd.f32 %v2040_v35, %v1795_v18  ;;  %v3895_v26 = vadd.f32 %v2041_v30, %v1796_v19 }
  0xbe   : > { %4748 = vst [vmem:[#allocation13_spill] sm:$0xff] %v3883_v59  ;;  %4749 = vst [vmem:[#allocation14_spill] sm:$0xff] %v3885_v3  ;;  %v3897_v0 = vadd.f32 %v2007_v31, %v1762_v37  ;;  %v3899_v7 = vadd.f32 %v2015_v52, %v1770_v39  ;;  %v1763_v40 = vsel %vm1633_vm15, %v3869_v34, 0.0  ;;  %v3904_v49 = vrot.slane %v3547_v11, %v3057_v24 }
  0xbf   : > { %4750 = vst [vmem:[#allocation15_spill] sm:$0xff] %v3893_v53  ;;  %4751 = vst [vmem:[#allocation16_spill] sm:$0xff] %v3895_v26  ;;  %vm1888_vm1 = vcmp.eq.s32.totalorder %v3655_v8, %v3817_v36  ;;  %v3910_v1 = vrot.slane %v3561_v46, %v3051_v22  ;;  %vm1880_vm3 = vcmp.eq.s32.totalorder %v3563_v29, %v3877_v42  ;;  %v1771_v13 = vsel %vm1641_vm0, %v3813_v57, 0.0 }
  0xc0   : > { %4752 = vst [vmem:[#allocation17_spill] sm:$0xff] %v3897_v0  ;;  %4753 = vst [vmem:[#allocation18_spill] sm:$0xff] %v3899_v7  ;;  %vm1634_vm4 = vcmp.eq.s32.totalorder %v3563_v29, %v3881_v48  ;;  %v3919_v37 = vrot.slane %v3547_v11, %v3051_v22  ;;  %vm1881_vm5 = vcmp.eq.s32.totalorder %v3563_v29, %v3891_v14  ;;  %v2016_v24 = vsel %vm1888_vm1, %v3835_v12, 0.0 }
  0xc1   : > { %vm1649_vm9 = vcmp.eq.s32.totalorder %v3701_v54, %v3732_v4  ;;  %vm1896_vm6 = vcmp.eq.s32.totalorder %v3701_v54, %v3751_v20  ;;  %vm1642_vm7 = vcmp.eq.s32.totalorder %v3655_v8, %v3853_v21  ;;  %vm1889_vm2 = vcmp.eq.s32.totalorder %v3655_v8, %v3877_v42 }
  0xc2   : > { %vm1650_vm8 = vcmp.eq.s32.totalorder %v3701_v54, %v3791_v51  ;;  %vm1897_vm10 = vcmp.eq.s32.totalorder %v3701_v54, %v3817_v36  ;;  %v2008_v22 = vsel %vm1880_vm3, %v3904_v49, 0.0  ;;  %v1764_v18 = vsel %vm1634_vm4, %v3910_v1, 0.0 }
  0xc3   : > { %vm1643_vm11 = vcmp.eq.s32.totalorder %v3655_v8, %v3881_v48  ;;  %vm1890_vm12 = vcmp.eq.s32.totalorder %v3655_v8, %v3891_v14  ;;  %v2009_v35 = vsel %vm1881_vm5, %v3919_v37, 0.0  ;;  %v1779_v19 = vsel %vm1649_vm9, %v3738_v32, 0.0 }
  0xc4   : > { %v2024_v30 = vsel %vm1896_vm6, %v3761_v58, 0.0  ;;  %v1772_v31 = vsel %vm1642_vm7, %v3869_v34, 0.0  ;;  %v2017_v39 = vsel %vm1889_vm2, %v3904_v49, 0.0  ;;  %v1780_v52 = vsel %vm1650_vm8, %v3813_v57, 0.0 }
  0xc5   : > { %v2025_v15 = vsel %vm1897_vm10, %v3835_v12, 0.0  ;;  %vm1658_vm13 = vcmp.eq.s32.totalorder %v3755_v10, %v3732_v4  ;;  %v3951_v7 = vadd.f32 %v2016_v24, %v1771_v13  ;;  %v1773_v0 = vsel %vm1643_vm11, %v3910_v1, 0.0 }
  0xc6   : > { %v2018_v26 = vsel %vm1890_vm12, %v3919_v37, 0.0  ;;  %vm1905_vm14 = vcmp.eq.s32.totalorder %v3755_v10, %v3751_v20  ;;  %v3957_v8 = vadd.f32 %v2008_v22, %v1763_v40  ;;  %v3959_v3 = vadd.f32 %v2024_v30, %v1779_v19 }
  0xc7   : > { %4754 = vst [vmem:[#allocation19_spill] sm:$0xff] %v3951_v7  ;;  %vm1651_vm15 = vcmp.eq.s32.totalorder %v3701_v54, %v3853_v21  ;;  %vm1898_vm0 = vcmp.eq.s32.totalorder %v3701_v54, %v3877_v42  ;;  %v3965_v53 = vadd.f32 %v2009_v35, %v1764_v18  ;;  %v3967_v13 = vadd.f32 %v2017_v39, %v1772_v31 }
  0xc8   : > { %4755 = vst [vmem:[#allocation20_spill] sm:$0xff] %v3957_v8  ;;  %4756 = vst [vmem:[#allocation21_spill] sm:$0xff] %v3959_v3  ;;  %v3969_v24 = vadd.f32 %v2025_v15, %v1780_v52  ;;  %v1788_v7 = vsel %vm1658_vm13, %v3738_v32, 0.0  ;;  %v3972_v59 = vadd.f32 %v2018_v26, %v1773_v0  ;;  %v2033_v40 = vsel %vm1905_vm14, %v3761_v58, 0.0 }
  0xc9   : > { %4757 = vst [vmem:[#allocation22_spill] sm:$0xff] %v3965_v53  ;;  %4758 = vst [vmem:[#allocation23_spill] sm:$0xff] %v3967_v13  ;;  %vm1659_vm1 = vcmp.eq.s32.totalorder %v3755_v10, %v3791_v51  ;;  %vm1906_vm3 = vcmp.eq.s32.totalorder %v3755_v10, %v3817_v36  ;;  %v1781_v22 = vsel %vm1651_vm15, %v3869_v34, 0.0  ;;  %v2026_v18 = vsel %vm1898_vm0, %v3904_v49, 0.0 }
  0xca   : > { %4759 = vst [vmem:[#allocation24_spill] sm:$0xff] %v3969_v24  ;;  %4760 = vst [vmem:[#allocation25_spill] sm:$0xff] %v3972_v59  ;;  %vm1652_vm4 = vcmp.eq.s32.totalorder %v3701_v54, %v3881_v48  ;;  %vm1899_vm5 = vcmp.eq.s32.totalorder %v3701_v54, %v3891_v14  ;;  %vm1667_vm9 = vcmp.eq.s32.totalorder %v3809_v56, %v3732_v4  ;;  %v1789_v0 = vsel %vm1659_vm1, %v3813_v57, 0.0 }
  0xcb   : > { %vm1914_vm6 = vcmp.eq.s32.totalorder %v3809_v56, %v3751_v20  ;;  %vm1660_vm7 = vcmp.eq.s32.totalorder %v3755_v10, %v3853_v21  ;;  %vm1907_vm2 = vcmp.eq.s32.totalorder %v3755_v10, %v3877_v42  ;;  %v2034_v15 = vsel %vm1906_vm3, %v3835_v12, 0.0 }
  0xcc   : > { %vm1668_vm8 = vcmp.eq.s32.totalorder %v3809_v56, %v3791_v51  ;;  %vm1915_vm10 = vcmp.eq.s32.totalorder %v3809_v56, %v3817_v36  ;;  %v1782_v26 = vsel %vm1652_vm4, %v3910_v1, 0.0  ;;  %v2027_v35 = vsel %vm1899_vm5, %v3919_v37, 0.0 }
  0xcd   : > { %vm1661_vm11 = vcmp.eq.s32.totalorder %v3755_v10, %v3881_v48  ;;  %vm1908_vm12 = vcmp.eq.s32.totalorder %v3755_v10, %v3891_v14  ;;  %v1797_v19 = vsel %vm1667_vm9, %v3738_v32, 0.0  ;;  %v2042_v30 = vsel %vm1914_vm6, %v3761_v58, 0.0 }
  0xce   : > { %v1790_v31 = vsel %vm1660_vm7, %v3869_v34, 0.0  ;;  %v2035_v39 = vsel %vm1907_vm2, %v3904_v49, 0.0  ;;  %v4009_v52 = vadd.f32 %v2033_v40, %v1788_v7  ;;  %v1798_v59 = vsel %vm1668_vm8, %v3813_v57, 0.0 }
  0xcf   : > { %v2043_v24 = vsel %vm1915_vm10, %v3835_v12, 0.0  ;;  %vm1676_vm13 = vcmp.eq.s32.totalorder %v3586_v50, %v3732_v4  ;;  %v4015_v13 = vadd.f32 %v2026_v18, %v1781_v22  ;;  %v1791_v10 = vsel %vm1661_vm11, %v3910_v1, 0.0 }
  0xd0   : > { %4761 = vst [vmem:[#allocation26_spill] sm:$0xff] %v4009_v52  ;;  %v2036_v3 = vsel %vm1908_vm12, %v3919_v37, 0.0  ;;  %vm1923_vm14 = vcmp.eq.s32.totalorder %v3586_v50, %v3751_v20  ;;  %v4021_v53 = vadd.f32 %v2034_v15, %v1789_v0  ;;  %v4023_v7 = vadd.f32 %v2027_v35, %v1782_v26 }
  0xd1   : > { %v4025_v40 = vadd.f32 %v2042_v30, %v1797_v19  ;;  %v4027_v52 = vadd.f32 %v2035_v39, %v1790_v31  ;;  %v4029_v8 = vadd.f32 %v2043_v24, %v1798_v59  ;;  %v1806_v22 = vsel %vm1676_vm13, %v3738_v32, 0.0 }
  0xd2   : > { %4762 = vst [vmem:[#allocation27_spill] sm:$0xff] %v4023_v7  ;;  %vm1669_vm15 = vcmp.eq.s32.totalorder %v3809_v56, %v3853_v21  ;;  %vm1916_vm0 = vcmp.eq.s32.totalorder %v3809_v56, %v3877_v42  ;;  %v4036_v18 = vadd.f32 %v2036_v3, %v1791_v10  ;;  %v2051_v0 = vsel %vm1923_vm14, %v3761_v58, 0.0 }
  0xd3   : > { %4763 = vst [vmem:[#allocation28_spill] sm:$0xff] %v4025_v40  ;;  %4764 = vst [vmem:[#allocation29_spill] sm:$0xff] %v4027_v52  ;;  %vm1677_vm1 = vcmp.eq.s32.totalorder %v3586_v50, %v3791_v51  ;;  %vm1924_vm3 = vcmp.eq.s32.totalorder %v3586_v50, %v3817_v36  ;;  %vm1670_vm4 = vcmp.eq.s32.totalorder %v3809_v56, %v3881_v48  ;;  %v1799_v10 = vsel %vm1669_vm15, %v3869_v34, 0.0 }
  0xd4   : > { %4765 = vst [vmem:[#allocation30_spill] sm:$0xff] %v4029_v8  ;;  %4766 = vst [vmem:[#allocation31_spill] sm:$0xff] %v4036_v18  ;;  %vm1917_vm5 = vcmp.eq.s32.totalorder %v3809_v56, %v3891_v14  ;;  %vm1685_vm9 = vcmp.eq.s32.totalorder %v3661_v28, %v3732_v4  ;;  %vm1932_vm6 = vcmp.eq.s32.totalorder %v3661_v28, %v3751_v20  ;;  %v2044_v59 = vsel %vm1916_vm0, %v3904_v49, 0.0 }
  0xd5   : > { %vm1678_vm7 = vcmp.eq.s32.totalorder %v3586_v50, %v3853_v21  ;;  %vm1925_vm2 = vcmp.eq.s32.totalorder %v3586_v50, %v3877_v42  ;;  %v1807_v3 = vsel %vm1677_vm1, %v3813_v57, 0.0  ;;  %v2052_v24 = vsel %vm1924_vm3, %v3835_v12, 0.0 }
  0xd6   : > { %vm1686_vm8 = vcmp.eq.s32.totalorder %v3661_v28, %v3791_v51  ;;  %vm1933_vm10 = vcmp.eq.s32.totalorder %v3661_v28, %v3817_v36  ;;  %v1800_v15 = vsel %vm1670_vm4, %v3910_v1, 0.0  ;;  %v2045_v26 = vsel %vm1917_vm5, %v3919_v37, 0.0 }
  0xd7   : > { %v1815_v35 = vsel %vm1685_vm9, %v3738_v32, 0.0  ;;  %v2060_v19 = vsel %vm1932_vm6, %v3761_v58, 0.0  ;;  %v1808_v30 = vsel %vm1678_vm7, %v3869_v34, 0.0  ;;  %v2053_v31 = vsel %vm1925_vm2, %v3904_v49, 0.0 }
  0xd8   : > { %vm1679_vm11 = vcmp.eq.s32.totalorder %v3586_v50, %v3881_v48  ;;  %vm1926_vm12 = vcmp.eq.s32.totalorder %v3586_v50, %v3891_v14  ;;  %v4073_v39 = vadd.f32 %v2051_v0, %v1806_v22  ;;  %v1816_v56 = vsel %vm1686_vm8, %v3813_v57, 0.0 }
  0xd9   : > { %v2061_v18 = vsel %vm1933_vm10, %v3835_v12, 0.0  ;;  %vm1694_vm13 = vcmp.eq.s32.totalorder %v3728_v6, %v3732_v4  ;;  %v4079_v8 = vadd.f32 %v2044_v59, %v1799_v10  ;;  %v4081_v52 = vadd.f32 %v2052_v24, %v1807_v3  ;;  %v434_v3 = vld [vmem:[%s3497_s21 + $0x8] sm:$0x1] }
  0xda   : > { %4767 = vst [vmem:[#allocation32_spill] sm:$0xff] %v4073_v39  ;;  %v4083_v40 = vadd.f32 %v2045_v26, %v1800_v15  ;;  %vm1941_vm14 = vcmp.eq.s32.totalorder %v3728_v6, %v3751_v20  ;;  %v4087_v7 = vadd.f32 %v2060_v19, %v1815_v35  ;;  %v4089_v22 = vadd.f32 %v2053_v31, %v1808_v30 }
  0xdb   : > { %v1809_v0 = vsel %vm1679_vm11, %v3910_v1, 0.0  ;;  %v2054_v50 = vsel %vm1926_vm12, %v3919_v37, 0.0  ;;  %v4093_v39 = vadd.f32 %v2061_v18, %v1816_v56  ;;  %v1824_v10 = vsel %vm1694_vm13, %v3738_v32, 0.0  ;;  %v419_v18 = vld [vmem:[%s4708_s0 + $0x8] sm:$0x1] }
  0xdc   : > { %4768 = vst [vmem:[#allocation33_spill] sm:$0xff] %v4083_v40  ;;  %4769 = vst [vmem:[#allocation34_spill] sm:$0xff] %v4087_v7  ;;  %vm1687_vm15 = vcmp.eq.s32.totalorder %v3661_v28, %v3853_v21  ;;  %vm1934_vm0 = vcmp.eq.s32.totalorder %v3661_v28, %v3877_v42  ;;  %v2069_v59 = vsel %vm1941_vm14, %v3761_v58, 0.0  ;;  %vm1695_vm1 = vcmp.eq.s32.totalorder %v3728_v6, %v3791_v51 }
  0xdd   : > { %4770 = vst [vmem:[#allocation35_spill] sm:$0xff] %v4089_v22  ;;  %4771 = vst [vmem:[#allocation36_spill] sm:$0xff] %v4093_v39  ;;  %vm1942_vm3 = vcmp.eq.s32.totalorder %v3728_v6, %v3817_v36  ;;  %vm1688_vm4 = vcmp.eq.s32.totalorder %v3661_v28, %v3881_v48  ;;  %v4107_v56 = vadd.f32 %v2054_v50, %v1809_v0  ;;  %v1817_v24 = vsel %vm1687_vm15, %v3869_v34, 0.0 }
  0xde   : > { %vm1935_vm5 = vcmp.eq.s32.totalorder %v3661_v28, %v3891_v14  ;;  %vm1703_vm9 = vcmp.eq.s32.totalorder %v3777_v23, %v3732_v4  ;;  %vm1950_vm6 = vcmp.eq.s32.totalorder %v3777_v23, %v3751_v20  ;;  %v2062_v15 = vsel %vm1934_vm0, %v3904_v49, 0.0 }
  0xdf   : > { %4772 = vst [vmem:[#allocation37_spill] sm:$0xff] %v4107_v56  ;;  %vm1696_vm7 = vcmp.eq.s32.totalorder %v3728_v6, %v3853_v21  ;;  %vm1943_vm2 = vcmp.eq.s32.totalorder %v3728_v6, %v3877_v42  ;;  %v4125_v50 = vadd.f32 %v2069_v59, %v1824_v10  ;;  %v1825_v4 = vsel %vm1695_vm1, %v3813_v57, 0.0 }
  0xe0   : > { %v2070_v20 = vsel %vm1942_vm3, %v3835_v12, 0.0  ;;  %v1818_v26 = vsel %vm1688_vm4, %v3910_v1, 0.0  ;;  %v2063_v35 = vsel %vm1935_vm5, %v3919_v37, 0.0  ;;  %v1833_v19 = vsel %vm1703_vm9, %v3738_v32, 0.0 }
  0xe1   : > { %4773 = vst [vmem:[#allocation38_spill] sm:$0xff] %v4125_v50  ;;  %v2078_v30 = vsel %vm1950_vm6, %v3761_v58, 0.0  ;;  %v4133_v31 = vadd.f32 %v434_v3, %v419_v18  ;;  %v1826_v56 = vsel %vm1696_vm7, %v3869_v34, 0.0  ;;  %v2071_v10 = vsel %vm1943_vm2, %v3904_v49, 0.0 }
  0xe2   : > { %vm1704_vm8 = vcmp.eq.s32.totalorder %v3777_v23, %v3791_v51  ;;  %vm1951_vm10 = vcmp.eq.s32.totalorder %v3777_v23, %v3817_v36  ;;  %v4143_v18 = vadd.f32 %v2062_v15, %v1817_v24  ;;  %v4145_v3 = vadd.f32 %v2070_v20, %v1825_v4 }
  0xe3   : > { %v4149_v7 = vadd.f32 %v2063_v35, %v1818_v26  ;;  %v4151_v51 = vadd.f32 %v2078_v30, %v1833_v19  ;;  %v4153_v40 = vadd.f32 %v2071_v10, %v1826_v56  ;;  %vm1697_vm11 = vcmp.eq.s32.totalorder %v3728_v6, %v3881_v48 }
  0xe4   : > { %vm1944_vm12 = vcmp.eq.s32.totalorder %v3728_v6, %v3891_v14  ;;  %vm1705_vm13 = vcmp.eq.s32.totalorder %v3777_v23, %v3853_v21  ;;  %vm1952_vm14 = vcmp.eq.s32.totalorder %v3777_v23, %v3877_v42  ;;  %v4194_v30 = vrot.slane %v3561_v46, %v3065_v27 }
  0xe5   : > { %v2072_v20 = vsel %vm1944_vm12, %v3919_v37, 0.0  ;;  %vm1706_vm0 = vcmp.eq.s32.totalorder %v3777_v23, %v3881_v48  ;;  %vm1953_vm3 = vcmp.eq.s32.totalorder %v3777_v23, %v3891_v14  ;;  %v4785_v14 = vld [vmem:[#allocation22_spill] sm:$0xff] }
  0xe6   : > { %v1836_v21 = vsel %vm1706_vm0, %v3910_v1, 0.0 }
 0x111   : > { %v923_v0 = vpop.f32.mrb[0].mxu0  ;;  %v953_v28 = vpop.f32.mrb[0].mxu1 }
 0x112   : > { %v2166_v59 = vmul.f32 %v3657_v16, %v923_v0  ;;  %v2211_v32 = vmul.f32 %v3659_v9, %v953_v28  ;;  %v925_v50 = vpop.f32.mrb[1].mxu0  ;;  %v955_v58 = vpop.f32.mrb[1].mxu1  ;;  %v1834_v16 = vsel %vm1704_vm8, %v3813_v57, 0.0  ;;  %v2079_v9 = vsel %vm1951_vm10, %v3835_v12, 0.0 }
 0x113   : > { %v2167_v39 = vmul.f32 %v3665_v17, %v925_v50  ;;  %v2212_v22 = vmul.f32 %v3687_v33, %v955_v58  ;;  %v4731_v28 = vfloor.f32 %v4133_v31  ;;  %v4176_v4 = vadd.f32 %v2079_v9, %v1834_v16 }
 0x114   : > { %v4198_v0 = vrot.slane %v3547_v11, %v3065_v27 }
 0x115   : > { %v4158_v36 = vadd.f32 %v2167_v39, %v2166_v59  ;;  %v4160_v24 = vadd.f32 %v2212_v22, %v2211_v32  ;;  %v929_v15 = vpop.f32.mrb[2].mxu0  ;;  %v959_v17 = vpop.f32.mrb[2].mxu1  ;;  %v4172_v39 = vrot.slane %v3533_v2, %v3065_v27  ;;  %v2744_v26 = vtrunc.f32 %v4731_v28 }
 0x116   : > { %v2175_v33 = vmul.f32 %v3718_v60, %v929_v15  ;;  %v2220_v57 = vmul.f32 %v3726_v38, %v959_v17  ;;  %v931_v56 = vpop.f32.mrb[3].mxu0  ;;  %v961_v12 = vpop.f32.mrb[3].mxu1  ;;  %v4180_v60 = vrot.slane %v3558_v45, %v3065_v27  ;;  %v1827_v38 = vsel %vm1697_vm11, %v3910_v1, 0.0 }
 0x117   : > { %v2176_v22 = vmul.f32 %v3720_v61, %v931_v56  ;;  %v2221_v50 = vmul.f32 %v3734_v5, %v961_v12  ;;  %vm1635_vm15 = vcmp.eq.s32.totalorder %v3563_v29, %v4172_v39  ;;  %v1835_v27 = vsel %vm1705_vm13, %v3869_v34, 0.0 }
 0x118   : > { %vm1882_vm1 = vcmp.eq.s32.totalorder %v3563_v29, %v4180_v60  ;;  %v2081_v56 = vsel %vm1953_vm3, %v3919_v37, 0.0  ;;  %vm1653_vm10 = vcmp.eq.s32.totalorder %v3701_v54, %v4172_v39  ;;  %vm1900_vm11 = vcmp.eq.s32.totalorder %v3701_v54, %v4180_v60 }
 0x119   : > { %v4188_v35 = vadd.f32 %v2176_v22, %v2175_v33  ;;  %v4190_v61 = vadd.f32 %v2221_v50, %v2220_v57  ;;  %v935_v5 = vpop.f32.mrb[4].mxu0  ;;  %v965_v19 = vpop.f32.mrb[4].mxu1  ;;  %v1765_v33 = vsel %vm1635_vm15, %v4194_v30, 0.0  ;;  %v4774_v22 = vld [vmem:[#allocation13_spill] sm:$0xff]  ;;  %v4242_v50 = vadd.f32 %v2072_v20, %v1827_v38 }
 0x11a   : > { %v2184_v10 = vmul.f32 %v3763_v43, %v935_v5  ;;  %v2229_v59 = vmul.f32 %v3799_v55, %v965_v19  ;;  %v937_v32 = vpop.f32.mrb[5].mxu0  ;;  %v967_v58 = vpop.f32.mrb[5].mxu1  ;;  %v2080_v43 = vsel %vm1952_vm14, %v3904_v49, 0.0  ;;  %v2745_v55 = vcvt.f32.s32 %v2744_v26  ;;  %v4777_v19 = vld [vmem:[#allocation15_spill] sm:$0xff] }
 0x11b   : > { %v2185_v16 = vmul.f32 %v3783_v41, %v937_v32  ;;  %v2230_v9 = vmul.f32 %v3801_v63, %v967_v58  ;;  %v4222_v41 = vrot.slane %v3533_v2, %v3060_v25  ;;  %v2010_v2 = vsel %vm1882_vm1, %v4198_v0, 0.0 }
 0x11c   : > { %v4254_v26 = vrot.slane %v3558_v45, %v3060_v25  ;;  %vm4256_vm5 = vcmp.gt.s32.totalorder %v2745_v55, 0  ;;  %v4264_v20 = vadd.f32 %v2010_v2, %v1765_v33  ;;  %v4266_v5 = vadd.f32 %v2081_v56, %v1836_v21 }
 0x11d   : > { %v4224_v63 = vadd.f32 %v2185_v16, %v2184_v10  ;;  %v4226_v48 = vadd.f32 %v2230_v9, %v2229_v59  ;;  %v941_v15 = vpop.f32.mrb[6].mxu0  ;;  %v971_v17 = vpop.f32.mrb[6].mxu1  ;;  %vm1636_vm4 = vcmp.eq.s32.totalorder %v3563_v29, %v4222_v41  ;;  %v4778_v59 = vld [vmem:[#allocation14_spill] sm:$0xff]  ;;  %v4272_v16 = vrot.slane %v3547_v11, %v3060_v25  ;;  %v4779_v9 = vld [vmem:[#allocation7_spill] sm:$0xff] }
 0x11e   : > { %v2193_v34 = vmul.f32 %v3819_v62, %v941_v15  ;;  %v2238_v42 = vmul.f32 %v3871_v47, %v971_v17  ;;  %v943_v49 = vpop.f32.mrb[7].mxu0  ;;  %v973_v57 = vpop.f32.mrb[7].mxu1  ;;  %v4246_v62 = vrot.slane %v3561_v46, %v3060_v25  ;;  %v4248_v47 = vadd.f32 %v2080_v43, %v1835_v27  ;;  %v4780_v27 = vld [vmem:[#allocation16_spill] sm:$0xff]  ;;  %v4781_v15 = vld [vmem:[#allocation17_spill] sm:$0xff] }
 0x11f   : > { %v2194_v12 = vmul.f32 %v3855_v44, %v943_v49  ;;  %v2239_v1 = vmul.f32 %v4774_v22, %v973_v57  ;;  %vm1644_vm9 = vcmp.eq.s32.totalorder %v4779_v9, %v4172_v39  ;;  %v455_v21 = vsel %vm4256_vm5, %v2745_v55, 0  ;;  %v4782_v55 = vld [vmem:[#allocation18_spill] sm:$0xff]  ;;  %v4783_v57 = vld [vmem:[#allocation20_spill] sm:$0xff]  ;;  %v4784_v22 = vld [vmem:[#allocation19_spill] sm:$0xff] }
 0x120   : > { %v1766_v33 = vsel %vm1636_vm4, %v4246_v62, 0.0  ;;  %vm1883_vm6 = vcmp.eq.s32.totalorder %v3563_v29, %v4254_v26  ;;  %vm1891_vm7 = vcmp.eq.s32.totalorder %v4779_v9, %v4180_v60  ;;  %vm1645_vm2 = vcmp.eq.s32.totalorder %v4779_v9, %v4222_v41 }
 0x121   : > { %v4260_v44 = vadd.f32 %v2194_v12, %v2193_v34  ;;  %v4262_v37 = vadd.f32 %v2239_v1, %v2238_v42  ;;  %v947_v38 = vpop.f32.mrb[8].mxu0  ;;  %vm1892_vm8 = vcmp.eq.s32.totalorder %v4779_v9, %v4254_v26  ;;  %vm458_vm12 = vcmp.lt.s32.totalorder %v455_v21, 17 }
 0x122   : > { %v1042_v46 = vpop.f32.mrb[8].mxu1  ;;  %v2202_v10 = vmul.f32 %v4777_v19, %v947_v38  ;;  %v949_v45 = vpop.f32.mrb[9].mxu0  ;;  %v1774_v19 = vsel %vm1644_vm9, %v4194_v30, 0.0  ;;  %vm1654_vm13 = vcmp.eq.s32.totalorder %v3701_v54, %v4222_v41  ;;  %vm1901_vm14 = vcmp.eq.s32.totalorder %v3701_v54, %v4254_v26 }
 0x123   : > { %v2168_v32 = vmul.f32 %v4778_v59, %v1042_v46  ;;  %v1044_v58 = vpop.f32.mrb[9].mxu1  ;;  %v2203_v43 = vmul.f32 %v4780_v27, %v949_v45  ;;  %v2011_v46 = vsel %vm1883_vm6, %v4272_v16, 0.0  ;;  %v1775_v45 = vsel %vm1645_vm2, %v4246_v62, 0.0 }
 0x124   : > { %v2169_v17 = vmul.f32 %v4781_v15, %v1044_v58  ;;  %v1783_v15 = vsel %vm1653_vm10, %v4194_v30, 0.0 }
 0x125   : > { %v2256_v34 = vadd.f32 %v4158_v36, %v2168_v32  ;;  %v4291_v25 = vadd.f32 %v2203_v43, %v2202_v10  ;;  %v1161_v42 = vpop.f32.mrb[10].mxu0  ;;  %v2019_v32 = vsel %vm1891_vm7, %v4198_v0, 0.0  ;;  %v4320_v43 = vsel %vm458_vm12, %v455_v21, 17  ;;  %v4786_v21 = vld [vmem:[#allocation21_spill] sm:$0xff] }
 0x126   : > { %v1048_v11 = vpop.f32.mrb[10].mxu1  ;;  %v2170_v2 = vmul.f32 %v4783_v57, %v1161_v42  ;;  %v1163_v12 = vpop.f32.mrb[11].mxu0  ;;  %v4342_v28 = vadd.f32 %v2019_v32, %v1774_v19 }
 0x127   : > { %v2265_v36 = vadd.f32 %v2256_v34, %v2169_v17  ;;  %v2177_v49 = vmul.f32 %v4782_v55, %v1048_v11  ;;  %v1050_v56 = vpop.f32.mrb[11].mxu1  ;;  %v2171_v38 = vmul.f32 %v4785_v14, %v1163_v12  ;;  %v2028_v17 = vsel %vm1900_vm11, %v4198_v0, 0.0  ;;  %v4789_v12 = vld [vmem:[#allocation25_spill] sm:$0xff] }
 0x128   : > { %v2178_v1 = vmul.f32 %v4784_v22, %v1050_v56  ;;  %v4340_v14 = vadd.f32 %v2011_v46, %v1766_v33  ;;  %v461_v33 = vadd.s32 1, %v4320_v43  ;;  %v4357_v19 = vadd.f32 %v2028_v17, %v1783_v15  ;;  %v4795_v17 = vld [vmem:[#allocation5_spill] sm:$0xff] }
 0x129   : > { %v2257_v10 = vadd.f32 %v4188_v35, %v2177_v49  ;;  %v2274_v59 = vadd.f32 %v2265_v36, %v2170_v2  ;;  %v1167_v27 = vpop.f32.mrb[12].mxu0  ;;  %v2020_v35 = vsel %vm1892_vm8, %v4272_v16, 0.0  ;;  %v4787_v36 = vld [vmem:[#allocation23_spill] sm:$0xff]  ;;  %v4788_v2 = vld [vmem:[#allocation24_spill] sm:$0xff] }
 0x12a   : > { %v1054_v58 = vpop.f32.mrb[12].mxu1  ;;  %v2179_v55 = vmul.f32 %v4787_v36, %v1167_v27  ;;  %v1169_v57 = vpop.f32.mrb[13].mxu0  ;;  %v4355_v46 = vadd.f32 %v2020_v35, %v1775_v45  ;;  %4791 = vst [vmem:[#allocation13_spill] sm:$0xff] %v4357_v19  ;;  %v1784_v45 = vsel %vm1654_vm13, %v4246_v62, 0.0  ;;  %vm464_vm1 = vcmp.gt.s32.totalorder %v461_v33, 0 }
 0x12b   : > { %v2266_v34 = vadd.f32 %v2257_v10, %v2178_v1  ;;  %v4334_v11 = vadd.f32 %v2274_v59, %v2171_v38  ;;  %v2186_v42 = vmul.f32 %v4786_v21, %v1054_v58  ;;  %v1056_v49 = vpop.f32.mrb[13].mxu1  ;;  %v2180_v22 = vmul.f32 %v4789_v12, %v1169_v57  ;;  %v4792_v58 = vld [vmem:[#allocation26_spill] sm:$0xff] }
 0x12c   : > { %v2187_v56 = vmul.f32 %v4788_v2, %v1056_v49  ;;  %v4790_v10 = vfloor.f32 %v4133_v31  ;;  %v4797_v2 = vld [vmem:[#allocation28_spill] sm:$0xff] }
 0x12d   : > { %v2258_v23 = vadd.f32 %v4224_v63, %v2186_v42  ;;  %v2275_v6 = vadd.f32 %v2266_v34, %v2179_v55  ;;  %v1173_v38 = vpop.f32.mrb[14].mxu0  ;;  %v4793_v55 = vld [vmem:[#allocation27_spill] sm:$0xff] }
 0x12e   : > { %v1060_v1 = vpop.f32.mrb[14].mxu1  ;;  %v4352_v59 = vsub.f32 %v4133_v31, %v4790_v10  ;;  %v2188_v34 = vmul.f32 %v4015_v13, %v1173_v38  ;;  %v1175_v42 = vpop.f32.mrb[15].mxu0  ;;  %v4794_v13 = vld [vmem:[#allocation10_spill] sm:$0xff]  ;;  %v4799_v38 = vld [vmem:[#allocation29_spill] sm:$0xff] }
 0x12f   : > { %v2267_v63 = vadd.f32 %v2258_v23, %v2187_v56  ;;  %v4359_v32 = vadd.f32 %v2275_v6, %v2180_v22  ;;  %v2195_v27 = vmul.f32 %v4792_v58, %v1060_v1  ;;  %v1062_v21 = vpop.f32.mrb[15].mxu1  ;;  %v2189_v31 = vmul.f32 %v4793_v55, %v1175_v42  ;;  %v4801_v42 = vld [vmem:[#allocation31_spill] sm:$0xff] }
 0x130   : > { %v2196_v36 = vmul.f32 %v4021_v53, %v1062_v21  ;;  %v2029_v6 = vsel %vm1901_vm14, %v4272_v16, 0.0  ;;  %vm1662_vm15 = vcmp.eq.s32.totalorder %v4794_v13, %v4172_v39  ;;  %vm1909_vm0 = vcmp.eq.s32.totalorder %v4794_v13, %v4180_v60 }
 0x131   : > { %v2259_v23 = vadd.f32 %v4260_v44, %v2195_v27  ;;  %v2276_v35 = vadd.f32 %v2267_v63, %v2188_v34  ;;  %v1711_v15 = vsub.f32 1.0, %v4352_v59  ;;  %v4381_v49 = vrot.slane %v4352_v59, %v4795_v17  ;;  %v4800_v63 = vld [vmem:[#allocation30_spill] sm:$0xff] }
 0x132   : > { %v1066_v53 = vpop.f32.mrb[16].mxu1  ;;  %vm1663_vm3 = vcmp.eq.s32.totalorder %v4794_v13, %v4222_v41  ;;  %v1179_v12 = vpop.f32.mrb[16].mxu0  ;;  %v4388_v1 = vadd.f32 %v2029_v6, %v1784_v45  ;;  %v1792_v59 = vsel %vm1662_vm15, %v4194_v30, 0.0  ;;  %v2037_v34 = vsel %vm1909_vm0, %v4198_v0, 0.0 }
 0x133   : > { %v2268_v57 = vadd.f32 %v2259_v23, %v2196_v36  ;;  %v4385_v44 = vadd.f32 %v2276_v35, %v2189_v31  ;;  %v2204_v56 = vmul.f32 %v4797_v2, %v1066_v53  ;;  %v1068_v22 = vpop.f32.mrb[17].mxu1  ;;  %v2197_v10 = vmul.f32 %v4799_v38, %v1179_v12  ;;  %v1181_v27 = vpop.f32.mrb[17].mxu0  ;;  %v4802_v23 = vld [vmem:[#allocation12_spill] sm:$0xff] }
 0x134   : > { %4798 = vst [vmem:[#allocation14_spill] sm:$0xff] %v4388_v1  ;;  %v2205_v58 = vmul.f32 %v4800_v63, %v1068_v22  ;;  %v2198_v36 = vmul.f32 %v4801_v42, %v1181_v27  ;;  %v465_v55 = vsel %vm464_vm1, %v461_v33, 0  ;;  %v1793_v31 = vsel %vm1663_vm3, %v4246_v62, 0.0  ;;  %v4803_v53 = vld [vmem:[#allocation32_spill] sm:$0xff] }
 0x135   : > { %4796 = vst [vmem:[#allocation15_spill] sm:$0xff] %v4385_v44  ;;  %v2260_v21 = vadd.f32 %v4291_v25, %v2204_v56  ;;  %v2277_v45 = vadd.f32 %v2268_v57, %v2197_v10  ;;  %vm1910_vm4 = vcmp.eq.s32.totalorder %v4794_v13, %v4254_v26  ;;  %vm1671_vm5 = vcmp.eq.s32.totalorder %v4802_v23, %v4172_v39  ;;  %v4805_v10 = vld [vmem:[#allocation33_spill] sm:$0xff] }
 0x136   : > { %v1072_v6 = vpop.f32.mrb[18].mxu1  ;;  %vm1918_vm9 = vcmp.eq.s32.totalorder %v4802_v23, %v4180_v60  ;;  %v1185_v2 = vpop.f32.mrb[18].mxu0  ;;  %vm1672_vm6 = vcmp.eq.s32.totalorder %v4802_v23, %v4222_v41  ;;  %vm1919_vm7 = vcmp.eq.s32.totalorder %v4802_v23, %v4254_v26  ;;  %vm468_vm2 = vcmp.lt.s32.totalorder %v465_v55, 17 }
 0x137   : > { %v2269_v35 = vadd.f32 %v2260_v21, %v2205_v58  ;;  %v2213_v25 = vmul.f32 %v4803_v53, %v1072_v6  ;;  %v1074_v56 = vpop.f32.mrb[19].mxu1  ;;  %v4415_v33 = vadd.f32 %v2277_v45, %v2198_v36  ;;  %v2206_v57 = vmul.f32 %v4079_v8, %v1185_v2  ;;  %v1187_v22 = vpop.f32.mrb[19].mxu0  ;;  %v4806_v45 = vld [vmem:[#allocation34_spill] sm:$0xff] }
 0x138   : > { %v2214_v12 = vmul.f32 %v4081_v52, %v1074_v56  ;;  %v2207_v63 = vmul.f32 %v4805_v10, %v1187_v22  ;;  %v2038_v58 = vsel %vm1910_vm4, %v4272_v16, 0.0  ;;  %v1801_v27 = vsel %vm1671_vm5, %v4194_v30, 0.0  ;;  %v4807_v56 = vld [vmem:[#allocation35_spill] sm:$0xff]  ;;  %v4808_v22 = vld [vmem:[#allocation36_spill] sm:$0xff] }
 0x139   : > { %4804 = vst [vmem:[#allocation7_spill] sm:$0xff] %v4415_v33  ;;  %v2261_v38 = vadd.f32 %v4160_v24, %v2213_v25  ;;  %v2278_v21 = vadd.f32 %v2269_v35, %v2206_v57  ;;  %v4431_v52 = vrot.slane %v4320_v43, %v4795_v17  ;;  %v2046_v24 = vsel %vm1918_vm9, %v4198_v0, 0.0 }
 0x13a   : > { %v1078_v8 = vpop.f32.mrb[20].mxu1  ;;  %v1802_v42 = vsel %vm1672_vm6, %v4246_v62, 0.0  ;;  %v1191_v53 = vpop.f32.mrb[20].mxu0  ;;  %v469_v2 = vsel %vm468_vm2, %v465_v55, 17  ;;  %v2047_v35 = vsel %vm1919_vm7, %v4272_v16, 0.0  ;;  %v4448_v44 = vrot.slane %v1711_v15, %v4795_v17  ;;  %v4810_v15 = vld [vmem:[#allocation38_spill] sm:$0xff] }
 0x13b   : > { %v2270_v36 = vadd.f32 %v2261_v38, %v2214_v12  ;;  %v2222_v6 = vmul.f32 %v4806_v45, %v1078_v8  ;;  %v1080_v25 = vpop.f32.mrb[21].mxu1  ;;  %v4443_v43 = vadd.f32 %v2278_v21, %v2207_v63  ;;  %v2215_v57 = vmul.f32 %v4807_v56, %v1191_v53  ;;  %v1193_v33 = vpop.f32.mrb[21].mxu0  ;;  %v4809_v38 = vld [vmem:[#allocation37_spill] sm:$0xff] }
 0x13c   : > { %v2223_v10 = vmul.f32 %v4808_v22, %v1080_v25  ;;  %v2216_v8 = vmul.f32 %v4809_v38, %v1193_v33  ;;  %v4452_v55 = vadd.f32 %v2037_v34, %v1792_v59  ;;  %v4454_v45 = vadd.f32 %v2038_v58, %v1793_v31  ;;  %v4811_v59 = vld [vmem:[#allocation6_spill] sm:$0xff] }
 0x13d   : > { %v2262_v12 = vadd.f32 %v4190_v61, %v2222_v6  ;;  %v2279_v1 = vadd.f32 %v2270_v36, %v2215_v57  ;;  %v4457_v63 = vrot.slane %v469_v2, %v4795_v17  ;;  %v4459_v21 = vadd.f32 %v2046_v24, %v1801_v27 }
 0x13e   : > { %v1084_v19 = vpop.f32.mrb[22].mxu1  ;;  %v4461_v53 = vadd.f32 %v2047_v35, %v1802_v42  ;;  %v1197_v22 = vpop.f32.mrb[22].mxu0  ;;  %vm1637_vm8 = vcmp.eq.s32.totalorder %v3563_v29, %v4431_v52  ;;  %vm1680_vm10 = vcmp.eq.s32.totalorder %v4811_v59, %v4172_v39  ;;  %vm1927_vm11 = vcmp.eq.s32.totalorder %v4811_v59, %v4180_v60 }
 0x13f   : > { %v2271_v25 = vadd.f32 %v2262_v12, %v2223_v10  ;;  %v2231_v56 = vmul.f32 %v4810_v15, %v1084_v19  ;;  %v1086_v61 = vpop.f32.mrb[23].mxu1  ;;  %v4468_v34 = vadd.f32 %v2279_v1, %v2216_v8  ;;  %v2224_v17 = vmul.f32 %v4143_v18, %v1197_v22  ;;  %v1199_v33 = vpop.f32.mrb[23].mxu0 }
 0x140   : > { %v2232_v31 = vmul.f32 %v4145_v3, %v1086_v61  ;;  %v2225_v58 = vmul.f32 %v4149_v7, %v1199_v33  ;;  %vm1646_vm12 = vcmp.eq.s32.totalorder %v4779_v9, %v4431_v52  ;;  %vm1681_vm13 = vcmp.eq.s32.totalorder %v4811_v59, %v4222_v41 }
 0x141   : > { %v2263_v19 = vadd.f32 %v4226_v48, %v2231_v56  ;;  %v2280_v1 = vadd.f32 %v2271_v25, %v2224_v17  ;;  %v1767_v18 = vsel %vm1637_vm8, %v4448_v44, 0.0  ;;  %vm1884_vm14 = vcmp.eq.s32.totalorder %v3563_v29, %v4457_v63 }
 0x142   : > { %v1090_v27 = vpop.f32.mrb[24].mxu1  ;;  %vm1655_vm15 = vcmp.eq.s32.totalorder %v3701_v54, %v4431_v52  ;;  %v1203_v7 = vpop.f32.mrb[24].mxu0  ;;  %vm1664_vm0 = vcmp.eq.s32.totalorder %v4794_v13, %v4431_v52  ;;  %v1810_v42 = vsel %vm1680_vm10, %v4194_v30, 0.0  ;;  %v2012_v10 = vsel %vm1884_vm14, %v4381_v49, 0.0 }
 0x143   : > { %v2272_v3 = vadd.f32 %v2263_v19, %v2232_v31  ;;  %v2240_v48 = vmul.f32 %v4151_v51, %v1090_v27  ;;  %v1092_v24 = vpop.f32.mrb[25].mxu1  ;;  %v4492_v36 = vadd.f32 %v2280_v1, %v2225_v58  ;;  %v2233_v29 = vmul.f32 %v4153_v40, %v1203_v7  ;;  %v1205_v2 = vpop.f32.mrb[25].mxu0 }
 0x144   : > { %v2241_v6 = vmul.f32 %v4176_v4, %v1092_v24  ;;  %v2055_v51 = vsel %vm1927_vm11, %v4198_v0, 0.0  ;;  %v2234_v57 = vmul.f32 %v4242_v50, %v1205_v2  ;;  %v1776_v12 = vsel %vm1646_vm12, %v4448_v44, 0.0 }
 0x145   : > { %v2264_v35 = vadd.f32 %v4262_v37, %v2240_v48  ;;  %v2281_v40 = vadd.f32 %v2272_v3, %v2233_v29  ;;  %vm1893_vm1 = vcmp.eq.s32.totalorder %v4779_v9, %v4457_v63  ;;  %v1785_v4 = vsel %vm1655_vm15, %v4448_v44, 0.0 }
 0x146   : > { %v1280_v38 = vpop.f32.mrb[26].mxu1  ;;  %v1794_v37 = vsel %vm1664_vm0, %v4448_v44, 0.0  ;;  %v1209_v8 = vpop.f32.mrb[26].mxu0  ;;  %v4515_v56 = vadd.f32 %v2055_v51, %v1810_v42  ;;  %vm1673_vm3 = vcmp.eq.s32.totalorder %v4802_v23, %v4431_v52  ;;  %v2093_v33 = vadd.f32 %v2012_v10, %v1767_v18  ;;  %v4812_v18 = vld [vmem:[#allocation8_spill] sm:$0xff] }
 0x147   : > { %v2273_v50 = vadd.f32 %v2264_v35, %v2241_v6  ;;  %v2172_v25 = vmul.f32 %v4264_v20, %v1280_v38  ;;  %v1282_v15 = vpop.f32.mrb[27].mxu1  ;;  %v4519_v22 = vadd.f32 %v2281_v40, %v2234_v57  ;;  %v2242_v61 = vmul.f32 %v4248_v47, %v1209_v8  ;;  %v1211_v17 = vpop.f32.mrb[27].mxu0  ;;  %v4813_v57 = vld [vmem:[#allocation13_spill] sm:$0xff] }
 0x148   : > { %v2173_v31 = vmul.f32 %v4340_v14, %v1282_v15  ;;  %v2243_v58 = vmul.f32 %v4266_v5, %v1211_v17  ;;  %v2021_v20 = vsel %vm1893_vm1, %v4381_v49, 0.0  ;;  %v1811_v1 = vsel %vm1681_vm13, %v4246_v62, 0.0  ;;  %v4815_v17 = vld [vmem:[#allocation15_spill] sm:$0xff] }
 0x149   : > { %v2292_v19 = vadd.f32 %v4334_v11, %v2172_v25  ;;  %v2282_v27 = vadd.f32 %v2273_v50, %v2242_v61  ;;  %vm1902_vm4 = vcmp.eq.s32.totalorder %v3701_v54, %v4457_v63  ;;  %vm1911_vm5 = vcmp.eq.s32.totalorder %v4794_v13, %v4457_v63  ;;  %v4814_v50 = vld [vmem:[#allocation14_spill] sm:$0xff] }
 0x14a   : > { %v1286_v47 = vpop.f32.mrb[28].mxu1  ;;  %vm1928_vm9 = vcmp.eq.s32.totalorder %v4811_v59, %v4254_v26  ;;  %v1399_v11 = vpop.f32.mrb[28].mxu0  ;;  %vm1689_vm6 = vcmp.eq.s32.totalorder %v4812_v18, %v4172_v39  ;;  %vm1936_vm7 = vcmp.eq.s32.totalorder %v4812_v18, %v4180_v60  ;;  %v2102_v7 = vadd.f32 %v2021_v20, %v1776_v12 }
 0x14b   : > { %v2301_v5 = vadd.f32 %v2292_v19, %v2173_v31  ;;  %v2181_v9 = vmul.f32 %v4342_v28, %v1286_v47  ;;  %v1288_v14 = vpop.f32.mrb[29].mxu1  ;;  %v4544_v3 = vadd.f32 %v2282_v27, %v2243_v58  ;;  %v2174_v54 = vmul.f32 %v2093_v33, %v1399_v11  ;;  %v2659_v13 = vpop.f32.mrb[29].mxu0 }
 0x14c   : > { %v2182_v48 = vmul.f32 %v4355_v46, %v1288_v14  ;;  %v2030_v42 = vsel %vm1902_vm4, %v4381_v49, 0.0  ;;  %v2039_v28 = vsel %vm1911_vm5, %v4381_v49, 0.0  ;;  %v2056_v29 = vsel %vm1928_vm9, %v4272_v16, 0.0 }
 0x14d   : > { %v2293_v24 = vadd.f32 %v4359_v32, %v2181_v9  ;;  %v2310_v6 = vadd.f32 %v2301_v5, %v2174_v54  ;;  %vm1920_vm2 = vcmp.eq.s32.totalorder %v4802_v23, %v4457_v63  ;;  %v1819_v51 = vsel %vm1689_vm6, %v4194_v30, 0.0 }
 0x14e   : > { %v1292_v2 = vpop.f32.mrb[30].mxu1  ;;  %v2064_v35 = vsel %vm1936_vm7, %v4198_v0, 0.0  ;;  %v1404_v12 = vpop.f32.mrb[30].mxu0  ;;  %v1803_v40 = vsel %vm1673_vm3, %v4448_v44, 0.0  ;;  %vm1682_vm8 = vcmp.eq.s32.totalorder %v4811_v59, %v4431_v52  ;;  %v2111_v15 = vadd.f32 %v2030_v42, %v1785_v4 }
 0x14f   : > { %v2302_v46 = vadd.f32 %v2293_v24, %v2182_v48  ;;  %v2190_v10 = vmul.f32 %v4813_v57, %v1292_v2  ;;  %v1294_v32 = vpop.f32.mrb[31].mxu1  ;;  %v2183_v38 = vmul.f32 %v2102_v7, %v1404_v12  ;;  %v2662_v25 = vpop.f32.mrb[31].mxu0  ;;  %v2120_v61 = vadd.f32 %v2039_v28, %v1794_v37  ;;  %v4817_v48 = vld [vmem:[#allocation7_spill] sm:$0xff] }
 0x150   : > { %v2191_v8 = vmul.f32 %v4814_v50, %v1294_v32  ;;  %v2048_v33 = vsel %vm1920_vm2, %v4381_v49, 0.0  ;;  %v2137_v19 = vadd.f32 %v2056_v29, %v1811_v1  ;;  %v4565_v58 = vadd.f32 %v2064_v35, %v1819_v51  ;;  %v4816_v1 = vld [vmem:[#allocation9_spill] sm:$0xff] }
 0x151   : > { %v2294_v31 = vadd.f32 %v4815_v17, %v2190_v10  ;;  %v2311_v20 = vadd.f32 %v2302_v46, %v2183_v38  ;;  %vm1929_vm10 = vcmp.eq.s32.totalorder %v4811_v59, %v4457_v63  ;;  %vm1690_vm11 = vcmp.eq.s32.totalorder %v4812_v18, %v4222_v41 }
 0x152   : > { %v1298_v27 = vpop.f32.mrb[32].mxu1  ;;  %vm1937_vm12 = vcmp.eq.s32.totalorder %v4812_v18, %v4254_v26  ;;  %v1409_v37 = vpop.f32.mrb[32].mxu0  ;;  %vm1698_vm13 = vcmp.eq.s32.totalorder %v4816_v1, %v4172_v39  ;;  %vm1945_vm14 = vcmp.eq.s32.totalorder %v4816_v1, %v4180_v60  ;;  %v1812_v54 = vsel %vm1682_vm8, %v4448_v44, 0.0 }
 0x153   : > { %v2303_v23 = vadd.f32 %v2294_v31, %v2191_v8  ;;  %v2199_v4 = vmul.f32 %v4452_v55, %v1298_v27  ;;  %v1300_v47 = vpop.f32.mrb[33].mxu1  ;;  %v2725_v5 = vpack.c.bf16 %v2311_v20, %v2310_v6  ;;  %v2192_v9 = vmul.f32 %v2111_v15, %v1409_v37  ;;  %v2665_v14 = vpop.f32.mrb[33].mxu0  ;;  %v4819_v20 = vld [vmem:[#allocation11_spill] sm:$0xff] }
 0x154   : > { %v2200_v11 = vmul.f32 %v4454_v45, %v1300_v47  ;;  %v2057_v13 = vsel %vm1929_vm10, %v4381_v49, 0.0  ;;  %v1820_v7 = vsel %vm1690_vm11, %v4246_v62, 0.0  ;;  %v2065_v24 = vsel %vm1937_vm12, %v4272_v16, 0.0 }
 0x155   : > { %v2295_v55 = vadd.f32 %v4817_v48, %v2199_v4  ;;  %v2312_v42 = vadd.f32 %v2303_v23, %v2192_v9  ;;  %2726 = vmatpush3.bf16.msra.mxu1 %v2725_v5  ;;  %v1828_v29 = vsel %vm1698_vm13, %v4194_v30, 0.0  ;;  %v2073_v45 = vsel %vm1945_vm14, %v4198_v0, 0.0 }
 0x156   : > { %v1304_v28 = vpop.f32.mrb[34].mxu1  ;;  %vm1691_vm15 = vcmp.eq.s32.totalorder %v4812_v18, %v4431_v52  ;;  %v1414_v2 = vpop.f32.mrb[34].mxu0  ;;  %v4818_v35 = vmov 0.0|0.0   ;;  %vm1938_vm0 = vcmp.eq.s32.totalorder %v4812_v18, %v4457_v63  ;;  %vm1699_vm1 = vcmp.eq.s32.totalorder %v4816_v1, %v4222_v41 }
 0x157   : > { %v2304_v59 = vadd.f32 %v2295_v55, %v2200_v11  ;;  %v2208_v6 = vmul.f32 %v4459_v21, %v1304_v28  ;;  %v1306_v51 = vpop.f32.mrb[35].mxu1  ;;  %2727 = vmatprep.subr.bf16.mxu1 %v4818_v35  ;;  %v2201_v46 = vmul.f32 %v2120_v61, %v1414_v2  ;;  %v2668_v10 = vpop.f32.mrb[35].mxu0  ;;  %v2129_v12 = vadd.f32 %v2048_v33, %v1803_v40 }
 0x158   : > { %v2209_v57 = vmul.f32 %v4461_v53, %v1306_v51  ;;  %vm1946_vm3 = vcmp.eq.s32.totalorder %v4816_v1, %v4254_v26  ;;  %v2138_v32 = vadd.f32 %v2057_v13, %v1812_v54  ;;  %v2146_v38 = vadd.f32 %v2065_v24, %v1820_v7 }
 0x159   : > { %v2296_v21 = vadd.f32 %v4443_v43, %v2208_v6  ;;  %v1821_v50 = vsel %vm1691_vm15, %v4448_v44, 0.0  ;;  %v2313_v8 = vadd.f32 %v2304_v59, %v2201_v46  ;;  %v2154_v15 = vadd.f32 %v2073_v45, %v1828_v29 }
 0x15a   : > { %v1310_v25 = vpop.f32.mrb[36].mxu1  ;;  %v2066_v61 = vsel %vm1938_vm0, %v4381_v49, 0.0  ;;  %v1829_v53 = vsel %vm1699_vm1, %v4246_v62, 0.0  ;;  %v1419_v31 = vpop.f32.mrb[36].mxu0  ;;  %v2074_v43 = vsel %vm1946_vm3, %v4272_v16, 0.0  ;;  %vm1707_vm4 = vcmp.eq.s32.totalorder %v4819_v20, %v4172_v39 }
 0x15b   : > { %v2305_v40 = vadd.f32 %v2296_v21, %v2209_v57  ;;  %v2217_v17 = vmul.f32 %v4515_v56, %v1310_v25  ;;  %v1312_v33 = vpop.f32.mrb[37].mxu1  ;;  %v2728_v27 = vpack.c.bf16 %v2313_v8, %v2312_v42  ;;  %v2210_v18 = vmul.f32 %v2129_v12, %v1419_v31  ;;  %v2671_v4 = vpop.f32.mrb[37].mxu0 }
 0x15c   : > { %v2218_v23 = vmul.f32 %v2137_v19, %v1312_v33  ;;  %vm1954_vm5 = vcmp.eq.s32.totalorder %v4819_v20, %v4180_v60  ;;  %v2147_v47 = vadd.f32 %v2066_v61, %v1821_v50  ;;  %vm1700_vm9 = vcmp.eq.s32.totalorder %v4816_v1, %v4431_v52 }
 0x15d   : > { %v2297_v37 = vadd.f32 %v4468_v34, %v2217_v17  ;;  %vm1947_vm6 = vcmp.eq.s32.totalorder %v4816_v1, %v4457_v63  ;;  %v2314_v56 = vadd.f32 %v2305_v40, %v2210_v18  ;;  %2729 = vmatpush3.bf16.msra.mxu1 %v2728_v27  ;;  %v2155_v9 = vadd.f32 %v2074_v43, %v1829_v53 }
 0x15e   : > { %v1316_v5 = vpop.f32.mrb[38].mxu1  ;;  %vm1708_vm7 = vcmp.eq.s32.totalorder %v4819_v20, %v4222_v41  ;;  %vm1955_vm2 = vcmp.eq.s32.totalorder %v4819_v20, %v4254_v26  ;;  %v1424_v11 = vpop.f32.mrb[38].mxu0  ;;  %2730 = vmatprep.subr.bf16.mxu1 %v4818_v35  ;;  %v1837_v54 = vsel %vm1707_vm4, %v4194_v30, 0.0  ;;  %v2082_v41 = vsel %vm1954_vm5, %v4198_v0, 0.0 }
 0x15f   : > { %v2306_v19 = vadd.f32 %v2297_v37, %v2218_v23  ;;  %v2226_v34 = vmul.f32 %v4565_v58, %v1316_v5  ;;  %v1318_v14 = vpop.f32.mrb[39].mxu1  ;;  %v2219_v48 = vmul.f32 %v2138_v32, %v1424_v11  ;;  %v2674_v26 = vpop.f32.mrb[39].mxu0  ;;  %v1830_v58 = vsel %vm1700_vm9, %v4448_v44, 0.0 }
 0x160   : > { %v2227_v55 = vmul.f32 %v2146_v38, %v1318_v14  ;;  %v2075_v13 = vsel %vm1947_vm6, %v4381_v49, 0.0  ;;  %v1838_v30 = vsel %vm1708_vm7, %v4246_v62, 0.0  ;;  %v2083_v60 = vsel %vm1955_vm2, %v4272_v16, 0.0 }
 0x161   : > { %v2298_v39 = vadd.f32 %v4492_v36, %v2226_v34  ;;  %v2315_v0 = vadd.f32 %v2306_v19, %v2219_v48  ;;  %vm1709_vm8 = vcmp.eq.s32.totalorder %v4819_v20, %v4431_v52  ;;  %vm1956_vm10 = vcmp.eq.s32.totalorder %v4819_v20, %v4457_v63 }
 0x162   : > { %v1322_v7 = vpop.f32.mrb[40].mxu1  ;;  %v1429_v28 = vpop.f32.mrb[40].mxu0  ;;  %v2163_v1 = vadd.f32 %v2082_v41, %v1837_v54  ;;  %v2156_v45 = vadd.f32 %v2075_v13, %v1830_v58  ;;  %v2164_v2 = vadd.f32 %v2083_v60, %v1838_v30  ;;  %v1839_v51 = vsel %vm1709_vm8, %v4448_v44, 0.0 }
 0x163   : > { %v2307_v24 = vadd.f32 %v2298_v39, %v2227_v55  ;;  %v2235_v42 = vmul.f32 %v2154_v15, %v1322_v7  ;;  %v1324_v29 = vpop.f32.mrb[41].mxu1  ;;  %v2731_v59 = vpack.c.bf16 %v2315_v0, %v2314_v56  ;;  %v2228_v36 = vmul.f32 %v2147_v47, %v1429_v28  ;;  %v2677_v62 = vpop.f32.mrb[41].mxu0 }
 0x164   : > { %v2236_v6 = vmul.f32 %v2155_v9, %v1324_v29  ;;  %v2084_v52 = vsel %vm1956_vm10, %v4381_v49, 0.0  ;;  %v4820_v17 = vmov 0.0   ;;  %vm2319_vm11 = vcmask 588800  }
 0x165   : > { %v2299_v16 = vadd.f32 %v4519_v22, %v2235_v42  ;;  %v2316_v46 = vadd.f32 %v2307_v24, %v2228_v36  ;;  %2732 = vmatpush3.bf16.msra.mxu1 %v2731_v59  ;;  %v2165_v8 = vadd.f32 %v2084_v52, %v1839_v51 }
 0x166   : > { %v1328_v63 = vpop.f32.mrb[42].mxu1  ;;  %v1434_v12 = vpop.f32.mrb[42].mxu0  ;;  %2733 = vmatprep.subr.bf16.mxu1 %v4818_v35  ;;  %v437_v35 = vld [vmem:[%s4714_s6] sm:$0xf] }
 0x167   : > { %v2308_v57 = vadd.f32 %v2299_v16, %v2236_v6  ;;  %v2244_v10 = vmul.f32 %v2163_v1, %v1328_v63  ;;  %v1330_v21 = vpop.f32.mrb[43].mxu1  ;;  %v2237_v32 = vmul.f32 %v2156_v45, %v1434_v12  ;;  %v2680_v38 = vpop.f32.mrb[43].mxu0 }
 0x168   : > { %v2245_v50 = vmul.f32 %v2164_v2, %v1330_v21 }
 0x169   : > { %v2300_v22 = vadd.f32 %v4544_v3, %v2244_v10  ;;  %v2317_v25 = vadd.f32 %v2308_v57, %v2237_v32 }
 0x16a   : > { %v1439_v49 = vpop.f32.mrb[44].mxu0 }
 0x16b   : > { %v2309_v44 = vadd.f32 %v2300_v22, %v2245_v50  ;;  %v2734_v15 = vpack.c.bf16 %v2317_v25, %v2316_v46  ;;  %v2246_v61 = vmul.f32 %v2165_v8, %v1439_v49  ;;  %v2683_v53 = vpop.f32.mrb[45].mxu0 }
 0x16d   : > { %v2318_v40 = vadd.f32 %v2309_v44, %v2246_v61  ;;  %2735 = vmatpush3.bf16.msra.mxu1 %v2734_v15 }
 0x16e   : > { %2700 = vmatprep.subr.mxu1 %v4820_v17 }
 0x171   : > { %2701 = vmatpush3.msra.mxu1 %v2318_v40 }
 0x172   : > { %2703 = vmatmul.mubr.msk.f32.vlgmr.msra.gmra.mrb[44].mxu1 %vm2319_vm11, %v437_v35 }
 0x245   : > { %v2389_v3 = vpop.f32.mrb[44].mxu1 }
 0x246   : > { %2393 = vst [vmem:[%s380_s17] sm:$0xf] %v2389_v3  ;;  %v2704_v31 = vpop.f32.mrb[45].mxu1 }
 0x247   : > { %2839 = shalt.err (!%p2836_p5)
}
 0x248   : > { %s2840_s10 = scalar_lea.hbm %s4663_s22, 64  ;;  %s2844_s17 = scalar_lea.hbm %s4715_s7, 128 }
 0x249   : > { %p2841_p6 = scmp.ne.s32.totalorder %s4663_s22, %s2840_s10  ;;  %p2845_p10 = scmp.lt.u32.totalorder %s4663_s22, %s4715_s7 }
 0x24a   : > { %p2846_p11 = scmp.lt.u32.totalorder %s2844_s17, %s2840_s10  ;;  %p2848_p13 = scmp.lt.u32.totalorder %s2840_s10, %s4663_s22 }
 0x24b   : > { %p2842_p7 = pnand %p2841_p6, %p2990_p4 }
 0x24c   : > { %p2847_p12 = por %p2846_p11, %p2845_p10 }
 0x24d   : > { %p2843_p9 = pneg %p2842_p7 }
 0x24e   : > { %p2849_p0 = por %p2848_p13, %p2847_p12 }
 0x250   : > { %p2850_p1 = pnand %p2849_p0, %p2843_p9 }
 0x252   : > { %2853 = shalt.err (!%p2850_p1)
}
 0x253   : > { %2768 = dma.vmem_to_hbm [thread:$0]  (%p2990_p4), %s4658_s18, 64, %s4663_s22, %s2395_s23  }
 0x254 PF: > { %p2774_p2 = scmp.ge.s32.totalorder %s2904_s29, 2  ;;  %s2421_s21 = sand.u32 1, %s2884_s24  }
 0x255   : > { %s2422_s16 = scalar_lea.sflag [#allocation3], %s2421_s21 }
 0x256   : > { %p2771_p3 = pnand %p2774_p2, %p2997_p8 }
 0x258   : > { %2879 = dma.done.wait (!%p2771_p3), %s2422_s16, 64  }
 0x259   : > { %2881 = vsyncadd (!%p2771_p3), %s2422_s16, 4294967232  ;;  %s20_s29 = sadd.s32 1, %s2904_s29   ;;  %s4821_s24 = smov %s2888_s25 }
 0x25a   : > { %p17_p5 = scmp.ge.s32.totalorder %s20_s29, 4   ;;  %s4822_s25 = smov %s2892_s26 }
 0x25b   : > { %s4823_s26 = smov %s3003_s14  ;;  %s4824_s27 = smov %s2900_s28 }
 0x25c   : > { %s4825_s28 = smov %s4827_s9  ;;  %19 = sbr.rel (!%p17_p5) target bundleno = 4 (0x4), region = 98 }
 0x263   :  { %2427 = vsyncpa [#allocation3], 1 }
 0x264   :  { %2429 = vsyncpa [#allocation3 + $0x1], 1 }

</bundles_post_ra>
